<compile_context>
chip_gen: v7x
topology: tpu7x:2x2x1
jax: 0.10.0
libtpu: 0.0.40
codegen_flags: <defaults>
</compile_context>

<pallas_src>
import jax
import jax.numpy as jnp
from jax import lax
from jax.experimental import pallas as pl
from jax.experimental.pallas import tpu as pltpu

EPS = 1e-5       # InstanceNorm2d default eps
MARGIN = 128     # lane margin so every shifted 3x3 view is an in-bounds slice

# MXU input dtype. Kept f32 so the small test matches the f32 reference tightly.
# Set to jnp.bfloat16 on v6e/v7x at production sizes (accumulation and the
# InstanceNorm statistics stay in f32 either way).
_MXU_DTYPE = jnp.float32


def _make_kernel(C, H, W, PP):
    """Build the fused residual-block kernel for static (C, H, W, PP)."""
    Wp = W + 2
    SW = PP + 2 * MARGIN
    inv_hw = 1.0 / float(H * W)

    def kernel(x_ref, w1_ref, w2_ref, row_ref, col_ref, out_ref, scr_ref):
        # x_ref   : (C, PP)   reflection-padded sample, spatial dims flattened to lanes
        # w1_ref  : (9, C, C) tap k = 3*dh + dw of conv1, each (C_out, C_in)
        # w2_ref  : (9, C, C) same for conv2
        # row_ref : (1, PP) int32 padded-row index per lane (-1 on the zero tail)
        # col_ref : (1, PP) int32 padded-col index per lane (-1 on the zero tail)
        # out_ref : (C, PP)   x + block(x) on interior lanes (border/tail lanes junk)
        # scr_ref : (C, SW)   widened scratch; the image lives at lanes [MARGIN, MARGIN+PP)
        row = row_ref[...]
        col = col_ref[...]
        m_int = (row >= 1) & (row <= H) & (col >= 1) & (col <= W)
        m_row0 = row == 0
        m_rowL = row == H + 1
        m_col0 = col == 0
        m_colL = col == W + 1

        x = x_ref[...]

        # Place the current image into the widened scratch.
        scr_ref[...] = jnp.zeros((C, SW), jnp.float32)
        scr_ref[:, MARGIN:MARGIN + PP] = x

        def shifted(d):
            # value v with v[:, p] == image[:, p + d]   (static contiguous lane slice)
            return scr_ref[:, MARGIN + d:MARGIN + d + PP]

        def conv3x3(w_ref):
            acc = jnp.zeros((C, PP), jnp.float32)
            for dh in range(3):
                for dw in range(3):
                    d = (dh - 1) * Wp + (dw - 1)
                    tap = w_ref[3 * dh + dw].astype(_MXU_DTYPE)          # (C, C)
                    acc = acc + jnp.dot(tap, shifted(d).astype(_MXU_DTYPE),
                                        preferred_element_type=jnp.float32)
            return acc

        def inorm(y):
            # one-pass masked stats over the H*W interior lanes, all in f32
            ym = jnp.where(m_int, y, 0.0)
            s1 = jnp.sum(ym, axis=-1, keepdims=True)
            s2 = jnp.sum(ym * ym, axis=-1, keepdims=True)
            mean = s1 * inv_hw
            var = jnp.maximum(s2 * inv_hw - mean * mean, 0.0)
            return (y - mean) * lax.rsqrt(var + EPS)

        # ---- stage 1: conv3x3 -> InstanceNorm -> ReLU (bias cancelled by IN) ----
        y1 = jnp.maximum(inorm(conv3x3(w1_ref)), 0.0)

        # ---- in-VMEM reflection pad of y1 (rows first, then cols => corners OK) ----
        scr_ref[:, MARGIN:MARGIN + PP] = y1
        y1 = jnp.where(m_row0, shifted(2 * Wp), y1)
        y1 = jnp.where(m_rowL, shifted(-2 * Wp), y1)
        scr_ref[:, MARGIN:MARGIN + PP] = y1
        y1 = jnp.where(m_col0, shifted(2), y1)
        y1 = jnp.where(m_colL, shifted(-2), y1)
        scr_ref[:, MARGIN:MARGIN + PP] = y1

        # ---- stage 2: conv3x3 -> InstanceNorm, then residual add ----
        y2 = inorm(conv3x3(w2_ref))
        out_ref[...] = x + y2

    return kernel


@jax.jit
def residual_block(x, w1, b1, w2, b2):
    """Pallas implementation of ResidualBlock.forward. x: (N, C, H, W) f32.

    b1/b2 are accepted for parity with nn.Conv2d but intentionally unused: a
    per-channel bias added right before InstanceNorm is exactly cancelled by
    the mean subtraction (perf-review item; zero numerical change).
    """
    del b1, b2
    N, C, H, W = x.shape
    Hp, Wp = H + 2, W + 2
    P = Hp * Wp
    PP = ((P + 127) // 128) * 128          # lane-pad to a multiple of 128

    # Reflection-pad once in HBM (cheap), flatten padded spatial dims onto lanes,
    # zero-pad the flat axis to PP lanes.
    xpad = jnp.pad(x, ((0, 0), (0, 0), (1, 1), (1, 1)), mode="reflect")
    xflat = jnp.pad(xpad.reshape(N, C, P), ((0, 0), (0, 0), (0, PP - P)))

    # Per-lane padded (row, col) coordinates; -1 on the zero tail.
    idx = jnp.arange(PP, dtype=jnp.int32)
    valid = idx < P
    row_id = jnp.where(valid, idx // Wp, -1).reshape(1, PP)
    col_id = jnp.where(valid, idx % Wp, -1).reshape(1, PP)

    # Conv taps: w_stacked[3*dh + dw] = w[:, :, dh, dw]  (C_out, C_in).
    w1s = jnp.transpose(w1, (2, 3, 0, 1)).reshape(9, C, C)
    w2s = jnp.transpose(w2, (2, 3, 0, 1)).reshape(9, C, C)

    out_flat = pl.pallas_call(
        _make_kernel(C, H, W, PP),
        out_shape=jax.ShapeDtypeStruct((N, C, PP), jnp.float32),
        grid=(N,),
        in_specs=[
            pl.BlockSpec((None, C, PP), lambda n: (n, 0, 0)),   # padded sample
            pl.BlockSpec((9, C, C), lambda n: (0, 0, 0)),       # conv1 taps
            pl.BlockSpec((9, C, C), lambda n: (0, 0, 0)),       # conv2 taps
            pl.BlockSpec((1, PP), lambda n: (0, 0)),            # row ids
            pl.BlockSpec((1, PP), lambda n: (0, 0)),            # col ids
        ],
        out_specs=pl.BlockSpec((None, C, PP), lambda n: (n, 0, 0)),
        scratch_shapes=[pltpu.VMEM((C, PP + 2 * MARGIN), jnp.float32)],
        compiler_params=pltpu.CompilerParams(
            dimension_semantics=("parallel",)),
    )(xflat, w1s, w2s, row_id, col_id)

    # Un-flatten and slice out the interior (original H x W) pixels.
    out = out_flat[:, :, :P].reshape(N, C, Hp, Wp)[:, :, 1:H + 1, 1:W + 1]
    return out


# ------------------------- pure-JAX reference check ------------------------ #

def _ref_residual_block(x, w1, b1, w2, b2):
    def conv(h, w, b):
        hp = jnp.pad(h, ((0, 0), (0, 0), (1, 1), (1, 1)), mode="reflect")
        return lax.conv_general_dilated(
            hp, w, window_strides=(1, 1), padding="VALID",
            dimension_numbers=("NCHW", "OIHW", "NCHW"),
        ) + b[None, :, None, None]

    def inorm(h):
        m = jnp.mean(h, axis=(2, 3), keepdims=True)
        v = jnp.mean(jnp.square(h - m), axis=(2, 3), keepdims=True)
        return (h - m) * lax.rsqrt(v + EPS)

    y = jnp.maximum(inorm(conv(x, w1, b1)), 0.0)
    y = inorm(conv(y, w2, b2))
    return x + y


# ----------------------------------- main ----------------------------------- #

if __name__ == "__main__":
    N, C, H, W = 2, 4, 16, 16  # in_features = 4

    key = jax.random.PRNGKey(0)
    kx, kw1, kb1, kw2, kb2 = jax.random.split(key, 5)

    x = jax.random.normal(kx, (N, C, H, W), dtype=jnp.float32)
    # Conv2d(C, C, 3) parameter shapes: (C, C, 3, 3), (C,)
    w1 = 0.1 * jax.random.normal(kw1, (C, C, 3, 3), dtype=jnp.float32)
    b1 = 0.1 * jax.random.normal(kb1, (C,), dtype=jnp.float32)
    w2 = 0.1 * jax.random.normal(kw2, (C, C, 3, 3), dtype=jnp.float32)
    b2 = 0.1 * jax.random.normal(kb2, (C,), dtype=jnp.float32)

    out = jax.block_until_ready(residual_block(x, w1, b1, w2, b2))
    ref = jax.block_until_ready(_ref_residual_block(x, w1, b1, w2, b2))

    assert out.shape == (N, C, H, W)
    assert jnp.allclose(out, ref, atol=2e-3, rtol=2e-3)

    print("KERNEL_OK")
</pallas_src>

<mosaic_0001>
module attributes {stable_mosaic.version = 11 : i64} {
  func.func @kernel(%arg0: i32, %arg1: memref<1x4x384xf32, #tpu.memory_space<vmem>>, %arg2: memref<9x4x4xf32, #tpu.memory_space<vmem>>, %arg3: memref<9x4x4xf32, #tpu.memory_space<vmem>>, %arg4: memref<1x384xi32, #tpu.memory_space<vmem>>, %arg5: memref<1x384xi32, #tpu.memory_space<vmem>>, %arg6: memref<1x4x384xf32, #tpu.memory_space<vmem>>, %arg7: memref<4x640xf32, #tpu.memory_space<vmem>>) attributes {dimension_semantics = [#tpu.dimension_semantics<parallel>], iteration_bounds = array<i64: 2>, scalar_prefetch = 0 : i64, scratch_operands = 1 : i64, tpu.core_type = #tpu.core_type<tc>, window_params = [{transform_indices = @transform_0, window_bounds = array<i64: 1, 4, 384>}, {pipeline_mode = #tpu.pipeline_mode<synchronous>, transform_indices = @transform_1, window_bounds = array<i64: 9, 4, 4>}, {pipeline_mode = #tpu.pipeline_mode<synchronous>, transform_indices = @transform_2, window_bounds = array<i64: 9, 4, 4>}, {pipeline_mode = #tpu.pipeline_mode<synchronous>, transform_indices = @transform_3, window_bounds = array<i64: 1, 384>}, {pipeline_mode = #tpu.pipeline_mode<synchronous>, transform_indices = @transform_4, window_bounds = array<i64: 1, 384>}, {transform_indices = @transform_5, window_bounds = array<i64: 1, 4, 384>}]} {
    %c0 = arith.constant 0 : index
    %c0_0 = arith.constant 0 : index
    %0 = vector.load %arg4[%c0, %c0_0] : memref<1x384xi32, #tpu.memory_space<vmem>>, vector<1x384xi32>
    %c0_1 = arith.constant 0 : index
    %c0_2 = arith.constant 0 : index
    %1 = vector.load %arg5[%c0_1, %c0_2] : memref<1x384xi32, #tpu.memory_space<vmem>>, vector<1x384xi32>
    %c1_i32 = arith.constant 1 : i32
    %2 = vector.broadcast %c1_i32 : i32 to vector<1x384xi32>
    %3 = arith.cmpi sge, %0, %2 : vector<1x384xi32>
    %c16_i32 = arith.constant 16 : i32
    %4 = vector.broadcast %c16_i32 : i32 to vector<1x384xi32>
    %5 = arith.cmpi sle, %0, %4 : vector<1x384xi32>
    %6 = arith.andi %3, %5 : vector<1x384xi1>
    %c1_i32_3 = arith.constant 1 : i32
    %7 = vector.broadcast %c1_i32_3 : i32 to vector<1x384xi32>
    %8 = arith.cmpi sge, %1, %7 : vector<1x384xi32>
    %9 = arith.andi %6, %8 : vector<1x384xi1>
    %c16_i32_4 = arith.constant 16 : i32
    %10 = vector.broadcast %c16_i32_4 : i32 to vector<1x384xi32>
    %11 = arith.cmpi sle, %1, %10 : vector<1x384xi32>
    %12 = arith.andi %9, %11 : vector<1x384xi1>
    %c0_i32 = arith.constant 0 : i32
    %13 = vector.broadcast %c0_i32 : i32 to vector<1x384xi32>
    %14 = arith.cmpi eq, %0, %13 : vector<1x384xi32>
    %c17_i32 = arith.constant 17 : i32
    %15 = vector.broadcast %c17_i32 : i32 to vector<1x384xi32>
    %16 = arith.cmpi eq, %0, %15 : vector<1x384xi32>
    %c0_i32_5 = arith.constant 0 : i32
    %17 = vector.broadcast %c0_i32_5 : i32 to vector<1x384xi32>
    %18 = arith.cmpi eq, %1, %17 : vector<1x384xi32>
    %c17_i32_6 = arith.constant 17 : i32
    %19 = vector.broadcast %c17_i32_6 : i32 to vector<1x384xi32>
    %20 = arith.cmpi eq, %1, %19 : vector<1x384xi32>
    %c0_7 = arith.constant 0 : index
    %c0_8 = arith.constant 0 : index
    %c0_9 = arith.constant 0 : index
    %21 = vector.load %arg1[%c0_7, %c0_8, %c0_9] : memref<1x4x384xf32, #tpu.memory_space<vmem>>, vector<1x4x384xf32>
    %22 = vector.shape_cast %21 : vector<1x4x384xf32> to vector<4x384xf32>
    %cst = arith.constant 0.000000e+00 : f32
    %23 = vector.broadcast %cst : f32 to vector<4x640xf32>
    %c0_10 = arith.constant 0 : index
    %c0_11 = arith.constant 0 : index
    %24 = vector.load %arg7[%c0_10, %c0_11] : memref<4x640xf32, #tpu.memory_space<vmem>>, vector<4x640xf32>
    tpu.vector_store %arg7[%c0_10, %c0_11], %23 {strides = array<i32>} : memref<4x640xf32, #tpu.memory_space<vmem>>, vector<4x640xf32>,
    %c0_12 = arith.constant 0 : index
    %c128 = arith.constant 128 : index
    %25 = vector.load %arg7[%c0_12, %c128] : memref<4x640xf32, #tpu.memory_space<vmem>>, vector<4x384xf32>
    tpu.vector_store %arg7[%c0_12, %c128], %22 {strides = array<i32>} : memref<4x640xf32, #tpu.memory_space<vmem>>, vector<4x384xf32>,
    %cst_13 = arith.constant 0.000000e+00 : f32
    %26 = vector.broadcast %cst_13 : f32 to vector<4x384xf32>
    %c0_14 = arith.constant 0 : index
    %c0_15 = arith.constant 0 : index
    %c0_16 = arith.constant 0 : index
    %27 = vector.load %arg2[%c0_14, %c0_15, %c0_16] : memref<9x4x4xf32, #tpu.memory_space<vmem>>, vector<1x4x4xf32>
    %28 = vector.shape_cast %27 : vector<1x4x4xf32> to vector<4x4xf32>
    %c0_17 = arith.constant 0 : index
    %c109 = arith.constant 109 : index
    %29 = vector.load %arg7[%c0_17, %c109] : memref<4x640xf32, #tpu.memory_space<vmem>>, vector<4x384xf32>
    %cst_18 = arith.constant dense<0.000000e+00> : vector<4x384xf32>
    %30 = tpu.matmul %28, %29, %cst_18 {dimension_numbers = #tpu.dot_dimension_numbers<[1], [0], [0], [1], [0, 0, 1, 1], [], []>} : vector<4x4xf32>, vector<4x384xf32>, vector<4x384xf32> -> vector<4x384xf32>
    %31 = arith.addf %26, %30 : vector<4x384xf32>
    %c1 = arith.constant 1 : index
    %c0_19 = arith.constant 0 : index
    %c0_20 = arith.constant 0 : index
    %32 = vector.load %arg2[%c1, %c0_19, %c0_20] : memref<9x4x4xf32, #tpu.memory_space<vmem>>, vector<1x4x4xf32>
    %33 = vector.shape_cast %32 : vector<1x4x4xf32> to vector<4x4xf32>
    %c0_21 = arith.constant 0 : index
    %c110 = arith.constant 110 : index
    %34 = vector.load %arg7[%c0_21, %c110] : memref<4x640xf32, #tpu.memory_space<vmem>>, vector<4x384xf32>
    %cst_22 = arith.constant dense<0.000000e+00> : vector<4x384xf32>
    %35 = tpu.matmul %33, %34, %cst_22 {dimension_numbers = #tpu.dot_dimension_numbers<[1], [0], [0], [1], [0, 0, 1, 1], [], []>} : vector<4x4xf32>, vector<4x384xf32>, vector<4x384xf32> -> vector<4x384xf32>
    %36 = arith.addf %31, %35 : vector<4x384xf32>
    %c2 = arith.constant 2 : index
    %c0_23 = arith.constant 0 : index
    %c0_24 = arith.constant 0 : index
    %37 = vector.load %arg2[%c2, %c0_23, %c0_24] : memref<9x4x4xf32, #tpu.memory_space<vmem>>, vector<1x4x4xf32>
    %38 = vector.shape_cast %37 : vector<1x4x4xf32> to vector<4x4xf32>
    %c0_25 = arith.constant 0 : index
    %c111 = arith.constant 111 : index
    %39 = vector.load %arg7[%c0_25, %c111] : memref<4x640xf32, #tpu.memory_space<vmem>>, vector<4x384xf32>
    %cst_26 = arith.constant dense<0.000000e+00> : vector<4x384xf32>
    %40 = tpu.matmul %38, %39, %cst_26 {dimension_numbers = #tpu.dot_dimension_numbers<[1], [0], [0], [1], [0, 0, 1, 1], [], []>} : vector<4x4xf32>, vector<4x384xf32>, vector<4x384xf32> -> vector<4x384xf32>
    %41 = arith.addf %36, %40 : vector<4x384xf32>
    %c3 = arith.constant 3 : index
    %c0_27 = arith.constant 0 : index
    %c0_28 = arith.constant 0 : index
    %42 = vector.load %arg2[%c3, %c0_27, %c0_28] : memref<9x4x4xf32, #tpu.memory_space<vmem>>, vector<1x4x4xf32>
    %43 = vector.shape_cast %42 : vector<1x4x4xf32> to vector<4x4xf32>
    %c0_29 = arith.constant 0 : index
    %c127 = arith.constant 127 : index
    %44 = vector.load %arg7[%c0_29, %c127] : memref<4x640xf32, #tpu.memory_space<vmem>>, vector<4x384xf32>
    %cst_30 = arith.constant dense<0.000000e+00> : vector<4x384xf32>
    %45 = tpu.matmul %43, %44, %cst_30 {dimension_numbers = #tpu.dot_dimension_numbers<[1], [0], [0], [1], [0, 0, 1, 1], [], []>} : vector<4x4xf32>, vector<4x384xf32>, vector<4x384xf32> -> vector<4x384xf32>
    %46 = arith.addf %41, %45 : vector<4x384xf32>
    %c4 = arith.constant 4 : index
    %c0_31 = arith.constant 0 : index
    %c0_32 = arith.constant 0 : index
    %47 = vector.load %arg2[%c4, %c0_31, %c0_32] : memref<9x4x4xf32, #tpu.memory_space<vmem>>, vector<1x4x4xf32>
    %48 = vector.shape_cast %47 : vector<1x4x4xf32> to vector<4x4xf32>
    %c0_33 = arith.constant 0 : index
    %c128_34 = arith.constant 128 : index
    %49 = vector.load %arg7[%c0_33, %c128_34] : memref<4x640xf32, #tpu.memory_space<vmem>>, vector<4x384xf32>
    %cst_35 = arith.constant dense<0.000000e+00> : vector<4x384xf32>
    %50 = tpu.matmul %48, %49, %cst_35 {dimension_numbers = #tpu.dot_dimension_numbers<[1], [0], [0], [1], [0, 0, 1, 1], [], []>} : vector<4x4xf32>, vector<4x384xf32>, vector<4x384xf32> -> vector<4x384xf32>
    %51 = arith.addf %46, %50 : vector<4x384xf32>
    %c5 = arith.constant 5 : index
    %c0_36 = arith.constant 0 : index
    %c0_37 = arith.constant 0 : index
    %52 = vector.load %arg2[%c5, %c0_36, %c0_37] : memref<9x4x4xf32, #tpu.memory_space<vmem>>, vector<1x4x4xf32>
    %53 = vector.shape_cast %52 : vector<1x4x4xf32> to vector<4x4xf32>
    %c0_38 = arith.constant 0 : index
    %c129 = arith.constant 129 : index
    %54 = vector.load %arg7[%c0_38, %c129] : memref<4x640xf32, #tpu.memory_space<vmem>>, vector<4x384xf32>
    %cst_39 = arith.constant dense<0.000000e+00> : vector<4x384xf32>
    %55 = tpu.matmul %53, %54, %cst_39 {dimension_numbers = #tpu.dot_dimension_numbers<[1], [0], [0], [1], [0, 0, 1, 1], [], []>} : vector<4x4xf32>, vector<4x384xf32>, vector<4x384xf32> -> vector<4x384xf32>
    %56 = arith.addf %51, %55 : vector<4x384xf32>
    %c6 = arith.constant 6 : index
    %c0_40 = arith.constant 0 : index
    %c0_41 = arith.constant 0 : index
    %57 = vector.load %arg2[%c6, %c0_40, %c0_41] : memref<9x4x4xf32, #tpu.memory_space<vmem>>, vector<1x4x4xf32>
    %58 = vector.shape_cast %57 : vector<1x4x4xf32> to vector<4x4xf32>
    %c0_42 = arith.constant 0 : index
    %c145 = arith.constant 145 : index
    %59 = vector.load %arg7[%c0_42, %c145] : memref<4x640xf32, #tpu.memory_space<vmem>>, vector<4x384xf32>
    %cst_43 = arith.constant dense<0.000000e+00> : vector<4x384xf32>
    %60 = tpu.matmul %58, %59, %cst_43 {dimension_numbers = #tpu.dot_dimension_numbers<[1], [0], [0], [1], [0, 0, 1, 1], [], []>} : vector<4x4xf32>, vector<4x384xf32>, vector<4x384xf32> -> vector<4x384xf32>
    %61 = arith.addf %56, %60 : vector<4x384xf32>
    %c7 = arith.constant 7 : index
    %c0_44 = arith.constant 0 : index
    %c0_45 = arith.constant 0 : index
    %62 = vector.load %arg2[%c7, %c0_44, %c0_45] : memref<9x4x4xf32, #tpu.memory_space<vmem>>, vector<1x4x4xf32>
    %63 = vector.shape_cast %62 : vector<1x4x4xf32> to vector<4x4xf32>
    %c0_46 = arith.constant 0 : index
    %c146 = arith.constant 146 : index
    %64 = vector.load %arg7[%c0_46, %c146] : memref<4x640xf32, #tpu.memory_space<vmem>>, vector<4x384xf32>
    %cst_47 = arith.constant dense<0.000000e+00> : vector<4x384xf32>
    %65 = tpu.matmul %63, %64, %cst_47 {dimension_numbers = #tpu.dot_dimension_numbers<[1], [0], [0], [1], [0, 0, 1, 1], [], []>} : vector<4x4xf32>, vector<4x384xf32>, vector<4x384xf32> -> vector<4x384xf32>
    %66 = arith.addf %61, %65 : vector<4x384xf32>
    %c8 = arith.constant 8 : index
    %c0_48 = arith.constant 0 : index
    %c0_49 = arith.constant 0 : index
    %67 = vector.load %arg2[%c8, %c0_48, %c0_49] : memref<9x4x4xf32, #tpu.memory_space<vmem>>, vector<1x4x4xf32>
    %68 = vector.shape_cast %67 : vector<1x4x4xf32> to vector<4x4xf32>
    %c0_50 = arith.constant 0 : index
    %c147 = arith.constant 147 : index
    %69 = vector.load %arg7[%c0_50, %c147] : memref<4x640xf32, #tpu.memory_space<vmem>>, vector<4x384xf32>
    %cst_51 = arith.constant dense<0.000000e+00> : vector<4x384xf32>
    %70 = tpu.matmul %68, %69, %cst_51 {dimension_numbers = #tpu.dot_dimension_numbers<[1], [0], [0], [1], [0, 0, 1, 1], [], []>} : vector<4x4xf32>, vector<4x384xf32>, vector<4x384xf32> -> vector<4x384xf32>
    %71 = arith.addf %66, %70 : vector<4x384xf32>
    %cst_52 = arith.constant 0.000000e+00 : f32
    %72 = vector.shape_cast %12 : vector<1x384xi1> to vector<1x384xi1>
    %73 = vector.broadcast %72 : vector<1x384xi1> to vector<4x384xi1>
    %74 = vector.broadcast %cst_52 : f32 to vector<4x384xf32>
    %75 = arith.select %73, %71, %74 : vector<4x384xi1>, vector<4x384xf32>
    %cst_53 = arith.constant dense<0.000000e+00> : vector<4xf32>
    %76 = vector.multi_reduction <add>, %75, %cst_53 [1] : vector<4x384xf32> to vector<4xf32>
    %77 = vector.shape_cast %76 : vector<4xf32> to vector<4x1xf32>
    %78 = arith.mulf %75, %75 : vector<4x384xf32>
    %cst_54 = arith.constant dense<0.000000e+00> : vector<4xf32>
    %79 = vector.multi_reduction <add>, %78, %cst_54 [1] : vector<4x384xf32> to vector<4xf32>
    %80 = vector.shape_cast %79 : vector<4xf32> to vector<4x1xf32>
    %cst_55 = arith.constant 3.906250e-03 : f32
    %81 = vector.broadcast %cst_55 : f32 to vector<4x1xf32>
    %82 = arith.mulf %77, %81 : vector<4x1xf32>
    %cst_56 = arith.constant 3.906250e-03 : f32
    %83 = vector.broadcast %cst_56 : f32 to vector<4x1xf32>
    %84 = arith.mulf %80, %83 : vector<4x1xf32>
    %85 = arith.mulf %82, %82 : vector<4x1xf32>
    %86 = arith.subf %84, %85 : vector<4x1xf32>
    %cst_57 = arith.constant 0.000000e+00 : f32
    %87 = vector.broadcast %cst_57 : f32 to vector<4x1xf32>
    %88 = arith.maximumf %86, %87 : vector<4x1xf32>
    %89 = vector.broadcast %82 : vector<4x1xf32> to vector<4x384xf32>
    %90 = arith.subf %71, %89 : vector<4x384xf32>
    %cst_58 = arith.constant 9.99999974E-6 : f32
    %91 = vector.broadcast %cst_58 : f32 to vector<4x1xf32>
    %92 = arith.addf %88, %91 : vector<4x1xf32>
    %93 = math.rsqrt %92 : vector<4x1xf32>
    %94 = vector.broadcast %93 : vector<4x1xf32> to vector<4x384xf32>
    %95 = arith.mulf %90, %94 : vector<4x384xf32>
    %cst_59 = arith.constant 0.000000e+00 : f32
    %96 = vector.broadcast %cst_59 : f32 to vector<4x384xf32>
    %97 = arith.maximumf %95, %96 : vector<4x384xf32>
    %c0_60 = arith.constant 0 : index
    %c128_61 = arith.constant 128 : index
    %98 = vector.load %arg7[%c0_60, %c128_61] : memref<4x640xf32, #tpu.memory_space<vmem>>, vector<4x384xf32>
    tpu.vector_store %arg7[%c0_60, %c128_61], %97 {strides = array<i32>} : memref<4x640xf32, #tpu.memory_space<vmem>>, vector<4x384xf32>,
    %c0_62 = arith.constant 0 : index
    %c164 = arith.constant 164 : index
    %99 = vector.load %arg7[%c0_62, %c164] : memref<4x640xf32, #tpu.memory_space<vmem>>, vector<4x384xf32>
    %100 = vector.shape_cast %14 : vector<1x384xi1> to vector<1x384xi1>
    %101 = vector.broadcast %100 : vector<1x384xi1> to vector<4x384xi1>
    %102 = arith.select %101, %99, %97 : vector<4x384xi1>, vector<4x384xf32>
    %c0_63 = arith.constant 0 : index
    %c92 = arith.constant 92 : index
    %103 = vector.load %arg7[%c0_63, %c92] : memref<4x640xf32, #tpu.memory_space<vmem>>, vector<4x384xf32>
    %104 = vector.shape_cast %16 : vector<1x384xi1> to vector<1x384xi1>
    %105 = vector.broadcast %104 : vector<1x384xi1> to vector<4x384xi1>
    %106 = arith.select %105, %103, %102 : vector<4x384xi1>, vector<4x384xf32>
    %c0_64 = arith.constant 0 : index
    %c128_65 = arith.constant 128 : index
    %107 = vector.load %arg7[%c0_64, %c128_65] : memref<4x640xf32, #tpu.memory_space<vmem>>, vector<4x384xf32>
    tpu.vector_store %arg7[%c0_64, %c128_65], %106 {strides = array<i32>} : memref<4x640xf32, #tpu.memory_space<vmem>>, vector<4x384xf32>,
    %c0_66 = arith.constant 0 : index
    %c130 = arith.constant 130 : index
    %108 = vector.load %arg7[%c0_66, %c130] : memref<4x640xf32, #tpu.memory_space<vmem>>, vector<4x384xf32>
    %109 = vector.shape_cast %18 : vector<1x384xi1> to vector<1x384xi1>
    %110 = vector.broadcast %109 : vector<1x384xi1> to vector<4x384xi1>
    %111 = arith.select %110, %108, %106 : vector<4x384xi1>, vector<4x384xf32>
    %c0_67 = arith.constant 0 : index
    %c126 = arith.constant 126 : index
    %112 = vector.load %arg7[%c0_67, %c126] : memref<4x640xf32, #tpu.memory_space<vmem>>, vector<4x384xf32>
    %113 = vector.shape_cast %20 : vector<1x384xi1> to vector<1x384xi1>
    %114 = vector.broadcast %113 : vector<1x384xi1> to vector<4x384xi1>
    %115 = arith.select %114, %112, %111 : vector<4x384xi1>, vector<4x384xf32>
    %c0_68 = arith.constant 0 : index
    %c128_69 = arith.constant 128 : index
    %116 = vector.load %arg7[%c0_68, %c128_69] : memref<4x640xf32, #tpu.memory_space<vmem>>, vector<4x384xf32>
    tpu.vector_store %arg7[%c0_68, %c128_69], %115 {strides = array<i32>} : memref<4x640xf32, #tpu.memory_space<vmem>>, vector<4x384xf32>,
    %cst_70 = arith.constant 0.000000e+00 : f32
    %117 = vector.broadcast %cst_70 : f32 to vector<4x384xf32>
    %c0_71 = arith.constant 0 : index
    %c0_72 = arith.constant 0 : index
    %c0_73 = arith.constant 0 : index
    %118 = vector.load %arg3[%c0_71, %c0_72, %c0_73] : memref<9x4x4xf32, #tpu.memory_space<vmem>>, vector<1x4x4xf32>
    %119 = vector.shape_cast %118 : vector<1x4x4xf32> to vector<4x4xf32>
    %c0_74 = arith.constant 0 : index
    %c109_75 = arith.constant 109 : index
    %120 = vector.load %arg7[%c0_74, %c109_75] : memref<4x640xf32, #tpu.memory_space<vmem>>, vector<4x384xf32>
    %cst_76 = arith.constant dense<0.000000e+00> : vector<4x384xf32>
    %121 = tpu.matmul %119, %120, %cst_76 {dimension_numbers = #tpu.dot_dimension_numbers<[1], [0], [0], [1], [0, 0, 1, 1], [], []>} : vector<4x4xf32>, vector<4x384xf32>, vector<4x384xf32> -> vector<4x384xf32>
    %122 = arith.addf %117, %121 : vector<4x384xf32>
    %c1_77 = arith.constant 1 : index
    %c0_78 = arith.constant 0 : index
    %c0_79 = arith.constant 0 : index
    %123 = vector.load %arg3[%c1_77, %c0_78, %c0_79] : memref<9x4x4xf32, #tpu.memory_space<vmem>>, vector<1x4x4xf32>
    %124 = vector.shape_cast %123 : vector<1x4x4xf32> to vector<4x4xf32>
    %c0_80 = arith.constant 0 : index
    %c110_81 = arith.constant 110 : index
    %125 = vector.load %arg7[%c0_80, %c110_81] : memref<4x640xf32, #tpu.memory_space<vmem>>, vector<4x384xf32>
    %cst_82 = arith.constant dense<0.000000e+00> : vector<4x384xf32>
    %126 = tpu.matmul %124, %125, %cst_82 {dimension_numbers = #tpu.dot_dimension_numbers<[1], [0], [0], [1], [0, 0, 1, 1], [], []>} : vector<4x4xf32>, vector<4x384xf32>, vector<4x384xf32> -> vector<4x384xf32>
    %127 = arith.addf %122, %126 : vector<4x384xf32>
    %c2_83 = arith.constant 2 : index
    %c0_84 = arith.constant 0 : index
    %c0_85 = arith.constant 0 : index
    %128 = vector.load %arg3[%c2_83, %c0_84, %c0_85] : memref<9x4x4xf32, #tpu.memory_space<vmem>>, vector<1x4x4xf32>
    %129 = vector.shape_cast %128 : vector<1x4x4xf32> to vector<4x4xf32>
    %c0_86 = arith.constant 0 : index
    %c111_87 = arith.constant 111 : index
    %130 = vector.load %arg7[%c0_86, %c111_87] : memref<4x640xf32, #tpu.memory_space<vmem>>, vector<4x384xf32>
    %cst_88 = arith.constant dense<0.000000e+00> : vector<4x384xf32>
    %131 = tpu.matmul %129, %130, %cst_88 {dimension_numbers = #tpu.dot_dimension_numbers<[1], [0], [0], [1], [0, 0, 1, 1], [], []>} : vector<4x4xf32>, vector<4x384xf32>, vector<4x384xf32> -> vector<4x384xf32>
    %132 = arith.addf %127, %131 : vector<4x384xf32>
    %c3_89 = arith.constant 3 : index
    %c0_90 = arith.constant 0 : index
    %c0_91 = arith.constant 0 : index
    %133 = vector.load %arg3[%c3_89, %c0_90, %c0_91] : memref<9x4x4xf32, #tpu.memory_space<vmem>>, vector<1x4x4xf32>
    %134 = vector.shape_cast %133 : vector<1x4x4xf32> to vector<4x4xf32>
    %c0_92 = arith.constant 0 : index
    %c127_93 = arith.constant 127 : index
    %135 = vector.load %arg7[%c0_92, %c127_93] : memref<4x640xf32, #tpu.memory_space<vmem>>, vector<4x384xf32>
    %cst_94 = arith.constant dense<0.000000e+00> : vector<4x384xf32>
    %136 = tpu.matmul %134, %135, %cst_94 {dimension_numbers = #tpu.dot_dimension_numbers<[1], [0], [0], [1], [0, 0, 1, 1], [], []>} : vector<4x4xf32>, vector<4x384xf32>, vector<4x384xf32> -> vector<4x384xf32>
    %137 = arith.addf %132, %136 : vector<4x384xf32>
    %c4_95 = arith.constant 4 : index
    %c0_96 = arith.constant 0 : index
    %c0_97 = arith.constant 0 : index
    %138 = vector.load %arg3[%c4_95, %c0_96, %c0_97] : memref<9x4x4xf32, #tpu.memory_space<vmem>>, vector<1x4x4xf32>
    %139 = vector.shape_cast %138 : vector<1x4x4xf32> to vector<4x4xf32>
    %c0_98 = arith.constant 0 : index
    %c128_99 = arith.constant 128 : index
    %140 = vector.load %arg7[%c0_98, %c128_99] : memref<4x640xf32, #tpu.memory_space<vmem>>, vector<4x384xf32>
    %cst_100 = arith.constant dense<0.000000e+00> : vector<4x384xf32>
    %141 = tpu.matmul %139, %140, %cst_100 {dimension_numbers = #tpu.dot_dimension_numbers<[1], [0], [0], [1], [0, 0, 1, 1], [], []>} : vector<4x4xf32>, vector<4x384xf32>, vector<4x384xf32> -> vector<4x384xf32>
    %142 = arith.addf %137, %141 : vector<4x384xf32>
    %c5_101 = arith.constant 5 : index
    %c0_102 = arith.constant 0 : index
    %c0_103 = arith.constant 0 : index
    %143 = vector.load %arg3[%c5_101, %c0_102, %c0_103] : memref<9x4x4xf32, #tpu.memory_space<vmem>>, vector<1x4x4xf32>
    %144 = vector.shape_cast %143 : vector<1x4x4xf32> to vector<4x4xf32>
    %c0_104 = arith.constant 0 : index
    %c129_105 = arith.constant 129 : index
    %145 = vector.load %arg7[%c0_104, %c129_105] : memref<4x640xf32, #tpu.memory_space<vmem>>, vector<4x384xf32>
    %cst_106 = arith.constant dense<0.000000e+00> : vector<4x384xf32>
    %146 = tpu.matmul %144, %145, %cst_106 {dimension_numbers = #tpu.dot_dimension_numbers<[1], [0], [0], [1], [0, 0, 1, 1], [], []>} : vector<4x4xf32>, vector<4x384xf32>, vector<4x384xf32> -> vector<4x384xf32>
    %147 = arith.addf %142, %146 : vector<4x384xf32>
    %c6_107 = arith.constant 6 : index
    %c0_108 = arith.constant 0 : index
    %c0_109 = arith.constant 0 : index
    %148 = vector.load %arg3[%c6_107, %c0_108, %c0_109] : memref<9x4x4xf32, #tpu.memory_space<vmem>>, vector<1x4x4xf32>
    %149 = vector.shape_cast %148 : vector<1x4x4xf32> to vector<4x4xf32>
    %c0_110 = arith.constant 0 : index
    %c145_111 = arith.constant 145 : index
    %150 = vector.load %arg7[%c0_110, %c145_111] : memref<4x640xf32, #tpu.memory_space<vmem>>, vector<4x384xf32>
    %cst_112 = arith.constant dense<0.000000e+00> : vector<4x384xf32>
    %151 = tpu.matmul %149, %150, %cst_112 {dimension_numbers = #tpu.dot_dimension_numbers<[1], [0], [0], [1], [0, 0, 1, 1], [], []>} : vector<4x4xf32>, vector<4x384xf32>, vector<4x384xf32> -> vector<4x384xf32>
    %152 = arith.addf %147, %151 : vector<4x384xf32>
    %c7_113 = arith.constant 7 : index
    %c0_114 = arith.constant 0 : index
    %c0_115 = arith.constant 0 : index
    %153 = vector.load %arg3[%c7_113, %c0_114, %c0_115] : memref<9x4x4xf32, #tpu.memory_space<vmem>>, vector<1x4x4xf32>
    %154 = vector.shape_cast %153 : vector<1x4x4xf32> to vector<4x4xf32>
    %c0_116 = arith.constant 0 : index
    %c146_117 = arith.constant 146 : index
    %155 = vector.load %arg7[%c0_116, %c146_117] : memref<4x640xf32, #tpu.memory_space<vmem>>, vector<4x384xf32>
    %cst_118 = arith.constant dense<0.000000e+00> : vector<4x384xf32>
    %156 = tpu.matmul %154, %155, %cst_118 {dimension_numbers = #tpu.dot_dimension_numbers<[1], [0], [0], [1], [0, 0, 1, 1], [], []>} : vector<4x4xf32>, vector<4x384xf32>, vector<4x384xf32> -> vector<4x384xf32>
    %157 = arith.addf %152, %156 : vector<4x384xf32>
    %c8_119 = arith.constant 8 : index
    %c0_120 = arith.constant 0 : index
    %c0_121 = arith.constant 0 : index
    %158 = vector.load %arg3[%c8_119, %c0_120, %c0_121] : memref<9x4x4xf32, #tpu.memory_space<vmem>>, vector<1x4x4xf32>
    %159 = vector.shape_cast %158 : vector<1x4x4xf32> to vector<4x4xf32>
    %c0_122 = arith.constant 0 : index
    %c147_123 = arith.constant 147 : index
    %160 = vector.load %arg7[%c0_122, %c147_123] : memref<4x640xf32, #tpu.memory_space<vmem>>, vector<4x384xf32>
    %cst_124 = arith.constant dense<0.000000e+00> : vector<4x384xf32>
    %161 = tpu.matmul %159, %160, %cst_124 {dimension_numbers = #tpu.dot_dimension_numbers<[1], [0], [0], [1], [0, 0, 1, 1], [], []>} : vector<4x4xf32>, vector<4x384xf32>, vector<4x384xf32> -> vector<4x384xf32>
    %162 = arith.addf %157, %161 : vector<4x384xf32>
    %cst_125 = arith.constant 0.000000e+00 : f32
    %163 = vector.shape_cast %12 : vector<1x384xi1> to vector<1x384xi1>
    %164 = vector.broadcast %163 : vector<1x384xi1> to vector<4x384xi1>
    %165 = vector.broadcast %cst_125 : f32 to vector<4x384xf32>
    %166 = arith.select %164, %162, %165 : vector<4x384xi1>, vector<4x384xf32>
    %cst_126 = arith.constant dense<0.000000e+00> : vector<4xf32>
    %167 = vector.multi_reduction <add>, %166, %cst_126 [1] : vector<4x384xf32> to vector<4xf32>
    %168 = vector.shape_cast %167 : vector<4xf32> to vector<4x1xf32>
    %169 = arith.mulf %166, %166 : vector<4x384xf32>
    %cst_127 = arith.constant dense<0.000000e+00> : vector<4xf32>
    %170 = vector.multi_reduction <add>, %169, %cst_127 [1] : vector<4x384xf32> to vector<4xf32>
    %171 = vector.shape_cast %170 : vector<4xf32> to vector<4x1xf32>
    %cst_128 = arith.constant 3.906250e-03 : f32
    %172 = vector.broadcast %cst_128 : f32 to vector<4x1xf32>
    %173 = arith.mulf %168, %172 : vector<4x1xf32>
    %cst_129 = arith.constant 3.906250e-03 : f32
    %174 = vector.broadcast %cst_129 : f32 to vector<4x1xf32>
    %175 = arith.mulf %171, %174 : vector<4x1xf32>
    %176 = arith.mulf %173, %173 : vector<4x1xf32>
    %177 = arith.subf %175, %176 : vector<4x1xf32>
    %cst_130 = arith.constant 0.000000e+00 : f32
    %178 = vector.broadcast %cst_130 : f32 to vector<4x1xf32>
    %179 = arith.maximumf %177, %178 : vector<4x1xf32>
    %180 = vector.broadcast %173 : vector<4x1xf32> to vector<4x384xf32>
    %181 = arith.subf %162, %180 : vector<4x384xf32>
    %cst_131 = arith.constant 9.99999974E-6 : f32
    %182 = vector.broadcast %cst_131 : f32 to vector<4x1xf32>
    %183 = arith.addf %179, %182 : vector<4x1xf32>
    %184 = math.rsqrt %183 : vector<4x1xf32>
    %185 = vector.broadcast %184 : vector<4x1xf32> to vector<4x384xf32>
    %186 = arith.mulf %181, %185 : vector<4x384xf32>
    %187 = arith.addf %22, %186 : vector<4x384xf32>
    %c0_132 = arith.constant 0 : index
    %c0_133 = arith.constant 0 : index
    %c0_134 = arith.constant 0 : index
    %188 = vector.load %arg6[%c0_132, %c0_133, %c0_134] : memref<1x4x384xf32, #tpu.memory_space<vmem>>, vector<1x4x384xf32>
    %189 = vector.shape_cast %188 : vector<1x4x384xf32> to vector<4x384xf32>
    %190 = vector.shape_cast %187 : vector<4x384xf32> to vector<1x4x384xf32>
    tpu.vector_store %arg6[%c0_132, %c0_133, %c0_134], %190 {strides = array<i32>} : memref<1x4x384xf32, #tpu.memory_space<vmem>>, vector<1x4x384xf32>,
    return
  }
  func.func @transform_0(%arg0: i32) -> (i32, i32, i32) {
    %c0_i32 = arith.constant 0 : i32
    %c0_i32_0 = arith.constant 0 : i32
    %c0_i32_1 = arith.constant 0 : i32
    return %arg0, %c0_i32, %c0_i32_0 : i32, i32, i32
  }
  func.func @transform_1(%arg0: i32) -> (i32, i32, i32) {
    %c0_i32 = arith.constant 0 : i32
    %c0_i32_0 = arith.constant 0 : i32
    %c0_i32_1 = arith.constant 0 : i32
    %c0_i32_2 = arith.constant 0 : i32
    return %c0_i32, %c0_i32_0, %c0_i32_1 : i32, i32, i32
  }
  func.func @transform_2(%arg0: i32) -> (i32, i32, i32) {
    %c0_i32 = arith.constant 0 : i32
    %c0_i32_0 = arith.constant 0 : i32
    %c0_i32_1 = arith.constant 0 : i32
    %c0_i32_2 = arith.constant 0 : i32
    return %c0_i32, %c0_i32_0, %c0_i32_1 : i32, i32, i32
  }
  func.func @transform_3(%arg0: i32) -> (i32, i32) {
    %c0_i32 = arith.constant 0 : i32
    %c0_i32_0 = arith.constant 0 : i32
    %c0_i32_1 = arith.constant 0 : i32
    return %c0_i32, %c0_i32_0 : i32, i32
  }
  func.func @transform_4(%arg0: i32) -> (i32, i32) {
    %c0_i32 = arith.constant 0 : i32
    %c0_i32_0 = arith.constant 0 : i32
    %c0_i32_1 = arith.constant 0 : i32
    return %c0_i32, %c0_i32_0 : i32, i32
  }
  func.func @transform_5(%arg0: i32) -> (i32, i32, i32) {
    %c0_i32 = arith.constant 0 : i32
    %c0_i32_0 = arith.constant 0 : i32
    %c0_i32_1 = arith.constant 0 : i32
    return %arg0, %c0_i32, %c0_i32_0 : i32, i32, i32
  }
}

</mosaic_0001>

<bundles_post_ra>
// kernel: residual_block.1
= control target key start
LH: loop header
LB: loop body
LE: loop exit
PB: predicated region body
PF: predicated region fallthrough
CT: control target
= control target key end

     0   :  { %s4029_s18 = smov 0   ;;  %s4519_s0 = inlined_call_operand.vmem [shape: f32[2,4,384], index: 0, kind: input, shape index: {}]   ;;  %s4520_s1 = inlined_call_operand.vmem [shape: f32[9,4,4], index: 1, kind: input, shape index: {}]   ;;  %s4521_s2 = inlined_call_operand.vmem [shape: f32[9,4,4], index: 2, kind: input, shape index: {}]   ;;  %s4522_s3 = inlined_call_operand.vmem [shape: s32[1,384], index: 3, kind: input, shape index: {}]   ;;  %s4523_s4 = inlined_call_operand.vmem [shape: s32[1,384], index: 4, kind: input, shape index: {}]   ;;  %s4524_s5 = inlined_call_operand.vmem [shape: f32[2,4,384], index: 5, kind: output, shape index: {}]  }
   0x1 LB: > { %s3627_s19 = sadd.s32 4294967295, %s3982_s18   ;;  %p3631_p0 = scmp.ge.s32.totalorder %s3982_s18, 1  ;;  %s3982_s18 = sphi %s4029_s18, %s15_s18  }
   0x2   : > { %p187_p1 = scmp.lt.s32.totalorder %s3982_s18, 3 }
   0x4   : > { %p188_p2 = pnand %p3631_p0, %p187_p1 }
   0x5   : > { %p215_p3 = scmp.lt.s32.totalorder (!%p188_p2), %s3627_s19, 1  ;;  %v3984_v0 = vmov (!%p188_p2), 0.0   ;;  %vm3985_vm0 = vmmov (!%p188_p2), 0   ;;  %s3986_s24 = smov (!%p188_p2), 18   ;;  %vm262_vm1 = vcmask (!%p188_p2), 146432   ;;  %vm270_vm2 = vcmask (!%p188_p2), 1043456  }
   0x6   : > { %191 = sbr.rel (%p188_p2) target bundleno = 1458 (0x5b2), region = 40  ;;  %240 = vst [vmem:[#allocation2] sm:$0xff] (!%p188_p2), %v3984_v0  ;;  %241 = vst [vmem:[#allocation2 + $0x8] sm:$0xff] (!%p188_p2), %v3984_v0  ;;  %3778 = vmatprep.subr.mxu1 (!%p188_p2), %v3984_v0  ;;  %341 = vmatprep.mubr.f32.mxu0 (!%p188_p2), %v3984_v0  ;;  %s3987_s25 = smov (!%p188_p2), 19   ;;  %v3634_v14 = vld [vmem:[%s4520_s1 + $0x4] sm:$0xf] (!%p188_p2) }
   0x7   : > { %242 = vst [vmem:[#allocation2 + $0x10] sm:$0xf] (!%p188_p2), %v3984_v0  ;;  %3780 = vmatprep.mubr.msk.f32.mxu1 (!%p188_p2), %vm3985_vm0, %v3984_v0  ;;  %s3988_s26 = smov (!%p188_p2), 17   ;;  %s3989_s27 = smov (!%p188_p2), 1   ;;  %vm266_vm3 = vcmask (!%p188_p2), 31744   ;;  %vm426_vm4 = vcmask (!%p188_p2), 154624  }
   0x8   : > { %s3990_s28 = smov (!%p188_p2), 127   ;;  %s3991_s29 = smov (!%p188_p2), 111   ;;  %v245_v24 = vld [vmem:[%s4520_s1] sm:$0xf] (!%p188_p2)  ;;  %vm4530_vm5 = vcmask (!%p188_p2), 138240   ;;  %vm4529_vm6 = vcmask (!%p188_p2), 7168  }
   0x9   : > { %s3992_s30 = smov (!%p188_p2), 110   ;;  %s3993_s6 = smov (!%p188_p2), 109   ;;  %v3645_v32 = vld [vmem:[%s4520_s1 + $0x8] sm:$0xf] (!%p188_p2)  ;;  %v3651_v40 = vld [vmem:[%s4520_s1 + $0xc] sm:$0xf] (!%p188_p2) }
   0xa   : > { %vm4528_vm7 = vcmask (!%p188_p2), 1039360   ;;  %v3657_v47 = vld [vmem:[%s4520_s1 + $0x10] sm:$0xf] (!%p188_p2)  ;;  %vm4527_vm8 = vcmask (!%p188_p2), 908288   ;;  %v3663_v55 = vld [vmem:[%s4520_s1 + $0x14] sm:$0xf] (!%p188_p2) }
   0xb   : > { %vm4526_vm9 = vcmask (!%p188_p2), 900096   ;;  %v3669_v63 = vld [vmem:[%s4520_s1 + $0x18] sm:$0xf] (!%p188_p2)  ;;  %vm4525_vm10 = vcmask (!%p188_p2), 891904   ;;  %s3995_s15 = smov (!%p188_p2), 92   ;;  %s3996_s16 = smov (!%p188_p2), 36  }
   0xc   : > { %s3997_s17 = smov (!%p188_p2), 2   ;;  %s3998_s21 = smov (!%p188_p2), 126  }
   0xd   : > { %s4558_s19 = smov (!%p215_p3, %s3627_s19), 1 }
   0xe   : > { %s3932_s20 = smul.u32 12, %s4558_s19 }
  0x10   : > { %s219_s23 = scalar_lea.vmem %s4519_s0, %s3932_s20 }
  0x11   : > { %v4050_v1 = vld [vmem:[%s219_s23] sm:$0xff]  ;;  %v4052_v2 = vld [vmem:[%s219_s23 + $0x8] sm:$0xf] }
  0x12   : > { %243 = vst [vmem:[#allocation2 + $0x4] sm:$0xff] %v4050_v1  ;;  %244 = vst [vmem:[#allocation2 + $0xc] sm:$0xf] %v4052_v2  ;;  %v4076_v8 = vcombine.high %v4050_v1, %v4050_v1 }
  0x19   : > { %v246_v3 = vld [vmem:[#allocation2] sm:$0xff]  ;;  %v247_v4 = vld [vmem:[#allocation2 + $0x8] sm:$0xff] }
  0x1a   : > { %254 = vrot.lane.b32.xlu1 %v246_v3, %s3986_s24  ;;  %v252_v5 = vcombine.high %v246_v3, %v246_v3  ;;  %v253_v6 = vcombine.high %v247_v4, %v247_v4  ;;  %v1089_v7 = vld [vmem:[#allocation2 + $0xc] sm:$0xff] }
  0x1b   : > { %v1093_v9 = vcombine.high %v1089_v7, %v1089_v7  ;;  %v929_v42 = vld [vmem:[#allocation2 + $0xc] sm:$0xf] }
  0x1c   : > { %256 = vrot.lane.b32.xlu0 %v252_v5, %s3986_s24 }
  0x1e   : > { %260 = vrot.lane.b32.xlu1 %v253_v6, %s3986_s24 }
  0x20   : > { %258 = vrot.lane.b32.xlu0 %v247_v4, %s3986_s24 }
  0x22   : > { %422 = vrot.lane.b32.xlu1 %v247_v4, %s3987_s25 }
  0x24   : > { %420 = vrot.lane.b32.xlu0 %v252_v5, %s3987_s25 }
  0x26   : > { %424 = vrot.lane.b32.xlu1 %v253_v6, %s3987_s25 }
  0x28   : > { %418 = vrot.lane.b32.xlu0 %v246_v3, %s3987_s25 }
  0x2a   : > { %592 = vrot.lane.b32.xlu1 %v247_v4, %s3988_s26 }
  0x2c   : > { %590 = vrot.lane.b32.xlu0 %v252_v5, %s3988_s26 }
  0x2e   : > { %594 = vrot.lane.b32.xlu1 %v253_v6, %s3988_s26 }
  0x30   : > { %588 = vrot.lane.b32.xlu0 %v246_v3, %s3988_s26 }
  0x32   : > { %765 = vrot.lane.b32.xlu1 %v247_v4, %s3989_s27 }
  0x34   : > { %763 = vrot.lane.b32.xlu0 %v252_v5, %s3989_s27 }
  0x36   : > { %767 = vrot.lane.b32.xlu1 %v253_v6, %s3989_s27 }
  0x38   : > { %761 = vrot.lane.b32.xlu0 %v246_v3, %s3989_s27 }
  0x3a   : > { %1098 = vrot.lane.b32.xlu1 %v1089_v7, %s3990_s28 }
  0x3c   : > { %1096 = vrot.lane.b32.xlu0 %v4076_v8, %s3990_s28 }
  0x3e   : > { %1100 = vrot.lane.b32.xlu1 %v1093_v9, %s3990_s28 }
  0x40   : > { %1094 = vrot.lane.b32.xlu0 %v4050_v1, %s3990_s28 }
  0x42   : > { %1271 = vrot.lane.b32.xlu1 %v1089_v7, %s3991_s29 }
  0x44   : > { %1269 = vrot.lane.b32.xlu0 %v4076_v8, %s3991_s29 }
  0x46   : > { %1273 = vrot.lane.b32.xlu1 %v1093_v9, %s3991_s29 }
  0x48   : > { %1267 = vrot.lane.b32.xlu0 %v4050_v1, %s3991_s29 }
  0x4a   : > { %1444 = vrot.lane.b32.xlu1 %v1089_v7, %s3992_s30 }
  0x4c   : > { %1442 = vrot.lane.b32.xlu0 %v4076_v8, %s3992_s30 }
  0x4e   : > { %1446 = vrot.lane.b32.xlu1 %v1093_v9, %s3992_s30 }
  0x50   : > { %1440 = vrot.lane.b32.xlu0 %v4050_v1, %s3992_s30 }
  0x52   : > { %1617 = vrot.lane.b32.xlu1 %v1089_v7, %s3993_s6 }
  0x54   : > { %1615 = vrot.lane.b32.xlu0 %v4076_v8, %s3993_s6 }
  0x56   : > { %1619 = vrot.lane.b32.xlu1 %v1093_v9, %s3993_s6 }
  0x58   : > { %1613 = vrot.lane.b32.xlu0 %v4050_v1, %s3993_s6 }
  0x8c   : > { %v255_v10 = vpop.permute.xlu1 %254 }
  0x8e   : > { %v257_v11 = vpop.permute.xlu0 %256 }
  0x8f   : > { %v263_v17 = vsel %vm262_vm1, %v255_v10, %v257_v11  ;;  %v3675_v10 = vld [vmem:[%s4520_s1 + $0x1c] sm:$0xf] }
  0x90   : > { %v261_v12 = vpop.permute.xlu1 %260 }
  0x92   : > { %v259_v13 = vpop.permute.xlu0 %258 }
  0x93   : > { %v264_v15 = vsel %vm262_vm1, %v257_v11, %v259_v13  ;;  %v265_v16 = vsel %vm262_vm1, %v259_v13, %v261_v12 }
  0x94   : > { %3635 = vmatprep.subr.msk.mxu0 %vm270_vm2, %v264_v15  ;;  %3779 = vmatpush3.msk.msra.mxu1 %vm270_vm2, %v265_v16  ;;  %v423_v18 = vpop.permute.xlu1 %422  ;;  %v4239_v15 = vld [vmem:[%s4522_s3] sm:$0x7] }
  0x95   : > { %3636 = vmatpush1.msk.msra.mxu0 %vm270_vm2, %v263_v17  ;;  %3781 = vmatmul.mubr.msk.f32.vlgmr.msra.gmra.mrb[0].mxu1 %vm266_vm3, %v3634_v14  ;;  %v4244_v16 = vld [vmem:[%s4523_s4] sm:$0x7]  ;;  %vm227_vm11 = vcmp.ge.s32.totalorder %v4239_v15, 1  ;;  %vm228_vm12 = vcmp.le.s32.totalorder %v4239_v15, 16  ;;  %v1779_v17 = vlaneseq }
  0x96   : > { %3637 = vmatmul.mubr.msk.f32.vlgmr.msra.gmra.mrb[0].mxu0 %vm266_vm3, %v3634_v14  ;;  %v421_v19 = vpop.permute.xlu0 %420  ;;  %3783 = vmatprep.subr.mxu1 %v3984_v0  ;;  %v3681_v14 = vld [vmem:[%s4520_s1 + $0x20] sm:$0xf]  ;;  %vm229_vm13 = vmand %vm227_vm11, %vm228_vm12  ;;  %vm230_vm14 = vcmp.ge.s32.totalorder %v4244_v16, 1  ;;  %vm234_vm12 = vcmp.eq.s32.totalorder %v4239_v15, 0 }
  0x97   : > { %v428_v20 = vsel %vm426_vm4, %v421_v19, %v423_v18  ;;  %3785 = vmatprep.mubr.msk.f32.mxu1 %vm3985_vm0, %v3984_v0  ;;  %503 = vmatprep.mubr.f32.mxu0 %v3984_v0  ;;  %vm231_vm15 = vmand %vm229_vm13, %vm230_vm14  ;;  %vm235_vm13 = vcmp.eq.s32.totalorder %v4239_v15, 17  ;;  %vm1866_vm14 = vcmask 752640  }
  0x98   : > { %3640 = vmatprep.subr.msk.mxu0 %vm270_vm2, %v428_v20  ;;  %v425_v21 = vpop.permute.xlu1 %424  ;;  %v3994_v20 = vmov 0  }
  0x99   : > { %v429_v22 = vsel %vm426_vm4, %v423_v18, %v425_v21  ;;  %v1780_v18 = vshrl.u32 %v1779_v17, 7  ;;  %v1838_v17 = vsel %vm234_vm12, 1, %v3994_v20 }
  0x9a   : > { %v419_v23 = vpop.permute.xlu0 %418  ;;  %3784 = vmatpush3.msk.msra.mxu1 %vm270_vm2, %v429_v22 }
  0x9b   : > { %v427_v25 = vsel %vm426_vm4, %v419_v23, %v421_v19  ;;  %3788 = vmatprep.subr.mxu1 %v3984_v0  ;;  %v4250_v19 = vsub.s32 2, %v1780_v18  ;;  %v4253_v22 = vsub.s32 0, %v1780_v18  ;;  %v4255_v23 = vsub.s32 1, %v1780_v18 }
  0x9c   : > { %3641 = vmatpush1.msk.msra.mxu0 %vm270_vm2, %v427_v25  ;;  %v593_v26 = vpop.permute.xlu1 %592 }
  0x9d   : > { %3786 = vmatmul.mubr.msk.f32.vlgmr.msra.gmra.mrb[0].mxu1 %vm266_vm3, %v245_v24 }
  0x9e   : > { %3642 = vmatmul.mubr.msk.f32.vlgmr.msra.gmra.mrb[0].mxu0 %vm266_vm3, %v245_v24  ;;  %v591_v27 = vpop.permute.xlu0 %590  ;;  %3790 = vmatprep.mubr.msk.f32.mxu1 %vm3985_vm0, %v3984_v0 }
  0x9f   : > { %v598_v28 = vsel %vm4530_vm5, %v591_v27, %v593_v26  ;;  %673 = vmatprep.mubr.f32.mxu0 %v3984_v0 }
  0xa0   : > { %3646 = vmatprep.subr.msk.mxu0 %vm270_vm2, %v598_v28  ;;  %v595_v29 = vpop.permute.xlu1 %594 }
  0xa1   : > { %v599_v30 = vsel %vm4530_vm5, %v593_v26, %v595_v29 }
  0xa2   : > { %v589_v31 = vpop.permute.xlu0 %588  ;;  %3789 = vmatpush3.msk.msra.mxu1 %vm270_vm2, %v599_v30 }
  0xa3   : > { %v597_v33 = vsel %vm4530_vm5, %v589_v31, %v591_v27  ;;  %3793 = vmatprep.subr.mxu1 %v3984_v0 }
  0xa4   : > { %3647 = vmatpush1.msk.msra.mxu0 %vm270_vm2, %v597_v33  ;;  %v766_v34 = vpop.permute.xlu1 %765 }
  0xa5   : > { %3791 = vmatmul.mubr.msk.f32.vlgmr.msra.gmra.mrb[0].mxu1 %vm266_vm3, %v3645_v32 }
  0xa6   : > { %3648 = vmatmul.mubr.msk.f32.vlgmr.msra.gmra.mrb[0].mxu0 %vm266_vm3, %v3645_v32  ;;  %v764_v35 = vpop.permute.xlu0 %763  ;;  %3795 = vmatprep.mubr.msk.f32.mxu1 %vm3985_vm0, %v3984_v0 }
  0xa7   : > { %v771_v36 = vsel %vm4529_vm6, %v764_v35, %v766_v34  ;;  %846 = vmatprep.mubr.f32.mxu0 %v3984_v0 }
  0xa8   : > { %3652 = vmatprep.subr.msk.mxu0 %vm270_vm2, %v771_v36  ;;  %v768_v37 = vpop.permute.xlu1 %767 }
  0xa9   : > { %v772_v38 = vsel %vm4529_vm6, %v766_v34, %v768_v37 }
  0xaa   : > { %v762_v39 = vpop.permute.xlu0 %761  ;;  %3794 = vmatpush3.msk.msra.mxu1 %vm270_vm2, %v772_v38 }
  0xab   : > { %v770_v41 = vsel %vm4529_vm6, %v762_v39, %v764_v35  ;;  %3798 = vmatprep.subr.mxu1 %v3984_v0 }
  0xac   : > { %3653 = vmatpush1.msk.msra.mxu0 %vm270_vm2, %v770_v41  ;;  %v1099_v43 = vpop.permute.xlu1 %1098 }
  0xad   : > { %3796 = vmatmul.mubr.msk.f32.vlgmr.msra.gmra.mrb[0].mxu1 %vm266_vm3, %v3651_v40  ;;  %3658 = vmatprep.subr.msk.mxu0 %vm270_vm2, %v4076_v8 }
  0xae   : > { %3654 = vmatmul.mubr.msk.f32.vlgmr.msra.gmra.mrb[0].mxu0 %vm266_vm3, %v3651_v40  ;;  %v1097_v44 = vpop.permute.xlu0 %1096  ;;  %3799 = vmatpush3.msk.msra.mxu1 %vm270_vm2, %v929_v42 }
  0xaf   : > { %3800 = vmatprep.mubr.msk.f32.mxu1 %vm3985_vm0, %v3984_v0  ;;  %3659 = vmatpush1.msk.msra.mxu0 %vm270_vm2, %v4050_v1  ;;  %v1104_v45 = vsel %vm4528_vm7, %v1097_v44, %v1099_v43 }
  0xb0   : > { %1006 = vmatprep.mubr.f32.mxu0 %v3984_v0  ;;  %3664 = vmatprep.subr.msk.mxu0 %vm270_vm2, %v1104_v45  ;;  %v1101_v46 = vpop.permute.xlu1 %1100 }
  0xb1   : > { %3803 = vmatprep.subr.mxu1 %v3984_v0  ;;  %v1105_v49 = vsel %vm4528_vm7, %v1099_v43, %v1101_v46 }
  0xb2   : > { %v1095_v48 = vpop.permute.xlu0 %1094 }
  0xb3   : > { %v1103_v50 = vsel %vm4528_vm7, %v1095_v48, %v1097_v44 }
  0xb4   : > { %v1272_v51 = vpop.permute.xlu1 %1271 }
  0xb5   : > { %3801 = vmatmul.mubr.msk.f32.vlgmr.msra.gmra.mrb[0].mxu1 %vm266_vm3, %v3657_v47 }
  0xb6   : > { %3660 = vmatmul.mubr.msk.f32.vlgmr.msra.gmra.mrb[0].mxu0 %vm266_vm3, %v3657_v47  ;;  %v1270_v52 = vpop.permute.xlu0 %1269  ;;  %3804 = vmatpush3.msk.msra.mxu1 %vm270_vm2, %v1105_v49 }
  0xb7   : > { %3665 = vmatpush1.msk.msra.mxu0 %vm270_vm2, %v1103_v50  ;;  %3805 = vmatprep.mubr.msk.f32.mxu1 %vm3985_vm0, %v3984_v0  ;;  %v1277_v53 = vsel %vm4527_vm8, %v1270_v52, %v1272_v51 }
  0xb8   : > { %1179 = vmatprep.mubr.f32.mxu0 %v3984_v0  ;;  %3670 = vmatprep.subr.msk.mxu0 %vm270_vm2, %v1277_v53  ;;  %v1274_v54 = vpop.permute.xlu1 %1273 }
  0xb9   : > { %3808 = vmatprep.subr.mxu1 %v3984_v0  ;;  %v1278_v57 = vsel %vm4527_vm8, %v1272_v51, %v1274_v54 }
  0xba   : > { %v1268_v56 = vpop.permute.xlu0 %1267 }
  0xbb   : > { %v1276_v58 = vsel %vm4527_vm8, %v1268_v56, %v1270_v52  ;;  %vm1906_vm8 = vcmask 293888  }
  0xbc   : > { %v1445_v59 = vpop.permute.xlu1 %1444 }
  0xbd   : > { %3806 = vmatmul.mubr.msk.f32.vlgmr.msra.gmra.mrb[0].mxu1 %vm266_vm3, %v3663_v55 }
  0xbe   : > { %3666 = vmatmul.mubr.msk.f32.vlgmr.msra.gmra.mrb[0].mxu0 %vm266_vm3, %v3663_v55  ;;  %v1443_v60 = vpop.permute.xlu0 %1442  ;;  %3809 = vmatpush3.msk.msra.mxu1 %vm270_vm2, %v1278_v57 }
  0xbf   : > { %3671 = vmatpush1.msk.msra.mxu0 %vm270_vm2, %v1276_v58  ;;  %3810 = vmatprep.mubr.msk.f32.mxu1 %vm3985_vm0, %v3984_v0  ;;  %v1450_v61 = vsel %vm4526_vm9, %v1443_v60, %v1445_v59 }
  0xc0   : > { %1352 = vmatprep.mubr.f32.mxu0 %v3984_v0  ;;  %3676 = vmatprep.subr.msk.mxu0 %vm270_vm2, %v1450_v61  ;;  %v1447_v62 = vpop.permute.xlu1 %1446 }
  0xc1   : > { %3813 = vmatprep.subr.mxu1 %v3984_v0  ;;  %v1451_v4 = vsel %vm4526_vm9, %v1445_v59, %v1447_v62 }
  0xc2   : > { %v1441_v3 = vpop.permute.xlu0 %1440 }
  0xc3   : > { %v1449_v5 = vsel %vm4526_vm9, %v1441_v3, %v1443_v60 }
  0xc4   : > { %v1618_v6 = vpop.permute.xlu1 %1617 }
  0xc5   : > { %3811 = vmatmul.mubr.msk.f32.vlgmr.msra.gmra.mrb[0].mxu1 %vm266_vm3, %v3669_v63 }
  0xc6   : > { %3672 = vmatmul.mubr.msk.f32.vlgmr.msra.gmra.mrb[0].mxu0 %vm266_vm3, %v3669_v63  ;;  %v1616_v7 = vpop.permute.xlu0 %1615  ;;  %3814 = vmatpush3.msk.msra.mxu1 %vm270_vm2, %v1451_v4 }
  0xc7   : > { %3677 = vmatpush1.msk.msra.mxu0 %vm270_vm2, %v1449_v5  ;;  %3815 = vmatprep.mubr.msk.f32.mxu1 %vm3985_vm0, %v3984_v0  ;;  %v1623_v8 = vsel %vm4525_vm10, %v1616_v7, %v1618_v6 }
  0xc8   : > { %1525 = vmatprep.mubr.f32.mxu0 %v3984_v0  ;;  %3682 = vmatprep.subr.msk.mxu0 %vm270_vm2, %v1623_v8  ;;  %v1620_v9 = vpop.permute.xlu1 %1619 }
  0xc9   : > { %3818 = vmatprep.subr.mxu1 %v3984_v0  ;;  %v1624_v12 = vsel %vm4525_vm10, %v1618_v6, %v1620_v9 }
  0xca   : > { %v1614_v11 = vpop.permute.xlu0 %1613 }
  0xcb   : > { %v1622_v13 = vsel %vm4525_vm10, %v1614_v11, %v1616_v7  ;;  %vm232_vm10 = vcmp.le.s32.totalorder %v4244_v16, 16 }
  0xcc   : > { %vm233_vm9 = vmand %vm231_vm15, %vm232_vm10 }
  0xcd   : > { %3816 = vmatmul.mubr.msk.f32.vlgmr.msra.gmra.mrb[0].mxu1 %vm266_vm3, %v3675_v10  ;;  %v1778_v21 = vsel %vm233_vm9, 1, %v3994_v20 }
  0xce   : > { %3678 = vmatmul.mubr.msk.f32.vlgmr.msra.gmra.mrb[0].mxu0 %vm266_vm3, %v3675_v10  ;;  %3819 = vmatpush3.msk.msra.mxu1 %vm270_vm2, %v1624_v12  ;;  %v1790_v24 = vrot.slane %v1778_v21, %v4250_v19  ;;  %v1782_v25 = vrot.slane %v1778_v21, %v4253_v22  ;;  %v1786_v26 = vrot.slane %v1778_v21, %v4255_v23  ;;  %v1878_v21 = vsel %vm235_vm13, 1, %v3994_v20 }
  0xcf   : > { %3683 = vmatpush1.msk.msra.mxu0 %vm270_vm2, %v1622_v13  ;;  %3820 = vmatprep.mubr.msk.f32.mxu1 %vm3985_vm0, %v3984_v0 }
  0xd0   : > { %1698 = vmatprep.mubr.f32.mxu0 %v3984_v0  ;;  %3823 = vmatprep.subr.mxu1 %v3984_v0  ;;  %vm4260_vm11 = vcmp.eq.s32.totalorder %v1790_v24, 1  ;;  %vm4264_vm10 = vcmp.eq.s32.totalorder %v1782_v25, 1  ;;  %vm4268_vm9 = vcmp.eq.s32.totalorder %v1786_v26, 1  ;;  %v1842_v25 = vrot.slane %v1838_v17, %v4253_v22 }
  0xd2   : > { %vm1851_vm15 = vcmp.eq.s32.totalorder %v1842_v25, 1 }
  0xd5   : > { %3821 = vmatmul.mubr.msk.f32.vlgmr.msra.gmra.mrb[0].mxu1 %vm266_vm3, %v3681_v14 }
  0xd6   : > { %3684 = vmatmul.mubr.msk.f32.vlgmr.msra.gmra.mrb[0].mxu0 %vm266_vm3, %v3681_v14  ;;  %3825 = vmatprep.mubr.msk.f32.mxu1 %vm3985_vm0, %v3984_v0 }
  0xd7   : > { %2101 = vmatprep.mubr.f32.mxu0 %v3984_v0 }
 0x1a8   : > { %v1771_v29 = vpop.f32.mrb[0].mxu1 }
 0x1a9   : > { %v1796_v31 = vsel %vm4260_vm11, %v1771_v29, 0.0  ;;  %v1700_v32 = vpop.f32.mrb[0].mxu0  ;;  %v3822_v33 = vpop.f32.mrb[1].mxu1 }
 0x1aa   : > { %v1794_v34 = vsel %vm4264_vm10, %v1700_v32, 0.0  ;;  %v1702_v35 = vpop.f32.mrb[1].mxu0  ;;  %v1806_v39 = vmul.f32 %v1796_v31, %v1796_v31  ;;  %v1800_v44 = vsel %vm270_vm2, %v1796_v31, 0.0  ;;  %v1882_v31 = vrot.slane %v1878_v21, %v4253_v22 }
 0x1ab   : > { %v1797_v36 = vsel %vm270_vm2, %v1794_v34, 0.0  ;;  %v1804_v37 = vmul.f32 %v1794_v34, %v1794_v34  ;;  %v1795_v38 = vsel %vm4268_vm9, %v1702_v35, 0.0  ;;  %v1850_v34 = vrot.slane %v1838_v17, %v4250_v19 }
 0x1ac   : > { %v1798_v40 = vsel %vm270_vm2, %v1795_v38, 0.0  ;;  %v1805_v41 = vmul.f32 %v1795_v38, %v1795_v38  ;;  %v1810_v48 = vsel %vm270_vm2, %v1806_v39, 0.0  ;;  %vm1891_vm13 = vcmp.eq.s32.totalorder %v1882_v31, 1 }
 0x1ad   : > { %v1799_v42 = vadd.f32 %v1798_v40, %v1797_v36  ;;  %v1807_v43 = vsel %vm270_vm2, %v1804_v37, 0.0  ;;  %v1890_v39 = vrot.slane %v1878_v21, %v4250_v19  ;;  %vm1853_vm6 = vcmp.eq.s32.totalorder %v1850_v34, 1 }
 0x1ae   : > { %v1808_v45 = vsel %vm270_vm2, %v1805_v41, 0.0 }
 0x1af   : > { %v1801_v46 = vadd.f32 %v1800_v44, %v1799_v42  ;;  %v1809_v47 = vadd.f32 %v1808_v45, %v1807_v43  ;;  %vm1893_vm5 = vcmp.eq.s32.totalorder %v1890_v39, 1 }
 0x1b1   : > { %1802 = vadd.xlane.f32.xlu0 %v1801_v46  ;;  %v1811_v49 = vadd.f32 %v1810_v48, %v1809_v47 }
 0x1b3   : > { %1812 = vadd.xlane.f32.xlu1 %v1811_v49 }
 0x23e   : > { %v1803_v50 = vpop.xlane.xlu0 %1802 }
 0x23f   : > { %v1814_v51 = vmul.f32 0.00390625, %v1803_v50 }
 0x240   : > { %v1813_v52 = vpop.xlane.xlu1 %1812 }
 0x241   : > { %v1815_v53 = vmul.f32 0.00390625, %v1813_v52  ;;  %v1816_v54 = vmul.f32 %v1814_v51, %v1814_v51  ;;  %v1819_v58 = vsub.f32 %v1700_v32, %v1814_v51  ;;  %v1820_v59 = vsub.f32 %v1702_v35, %v1814_v51 }
 0x242   : > { %v1821_v60 = vsub.f32 %v1771_v29, %v1814_v51  ;;  %v1846_v29 = vrot.slane %v1838_v17, %v4255_v23  ;;  %v1886_v32 = vrot.slane %v1878_v21, %v4255_v23 }
 0x243   : > { %v1817_v55 = vsub.f32 %v1815_v53, %v1816_v54 }
 0x244   : > { %vm1852_vm12 = vcmp.eq.s32.totalorder %v1846_v29, 1  ;;  %vm1892_vm7 = vcmp.eq.s32.totalorder %v1886_v32, 1 }
 0x245   : > { %v1818_v56 = vmax.f32 %v1817_v55, 0.0 }
 0x247   : > { %v1822_v57 = vadd.f32 1e-05, %v1818_v56 }
 0x249   : > { %3969 = vrsqrt.f32 %v1822_v57 }
 0x253   : > { %v3970_v61 = vpop.eup %3969 }
 0x254   : > { %v1824_v62 = vmul.f32 %v3970_v61, %v1819_v58  ;;  %v1825_v63 = vmul.f32 %v3970_v61, %v1820_v59  ;;  %v1826_v3 = vmul.f32 %v3970_v61, %v1821_v60 }
 0x256   : > { %v1827_v4 = vmax.f32 %v1824_v62, 0.0  ;;  %v1828_v5 = vmax.f32 %v1825_v63, 0.0  ;;  %v1829_v6 = vmax.f32 %v1826_v3, 0.0 }
 0x258   : > { %v1832_v7 = vcombine.low %v1827_v4, %v1828_v5  ;;  %1835 = vst [vmem:[#allocation2 + $0xc] sm:$0xf] %v1829_v6  ;;  %v3973_v10 = vcombine.low %v1828_v5, %v1828_v5 }
 0x25a   : > { %1834 = vst [vmem:[#allocation2 + $0x4] sm:$0xff] %v1832_v7 }
 0x25f   : > { %v1837_v8 = vld [vmem:[#allocation2 + $0xc] sm:$0xff] }
 0x260   : > { %1862 = vrot.lane.b32.xlu0 %v1837_v8, %s3995_s15  ;;  %v1857_v13 = vcombine.high %v1837_v8, %v1837_v8 }
 0x261   : > { %v1876_v9 = vld [vmem:[#allocation2] sm:$0xff]  ;;  %v1877_v12 = vld [vmem:[#allocation2 + $0x8] sm:$0xff] }
 0x262   : > { %1898 = vrot.lane.b32.xlu1 %v1876_v9, %s3996_s16  ;;  %v1896_v11 = vcombine.high %v1876_v9, %v1876_v9  ;;  %v1897_v14 = vcombine.high %v1877_v12, %v1877_v12 }
 0x264   : > { %1858 = vrot.lane.b32.xlu0 %v1832_v7, %s3995_s15 }
 0x266   : > { %1860 = vrot.lane.b32.xlu1 %v3973_v10, %s3995_s15 }
 0x268   : > { %1900 = vrot.lane.b32.xlu0 %v1896_v11, %s3996_s16 }
 0x26a   : > { %1902 = vrot.lane.b32.xlu1 %v1877_v12, %s3996_s16 }
 0x26c   : > { %1864 = vrot.lane.b32.xlu0 %v1857_v13, %s3995_s15 }
 0x26e   : > { %1904 = vrot.lane.b32.xlu1 %v1897_v14, %s3996_s16 }
 0x2d2   : > { %v1863_v18 = vpop.permute.xlu0 %1862 }
 0x2d4   : > { %v1899_v24 = vpop.permute.xlu1 %1898 }
 0x2d6   : > { %v1859_v26 = vpop.permute.xlu0 %1858 }
 0x2d8   : > { %v1861_v33 = vpop.permute.xlu1 %1860 }
 0x2d9   : > { %v1867_v15 = vsel %vm1866_vm14, %v1859_v26, %v1861_v33  ;;  %v1868_v35 = vsel %vm1866_vm14, %v1861_v33, %v1863_v18 }
 0x2da   : > { %v1901_v36 = vpop.permute.xlu0 %1900  ;;  %v1873_v37 = vsel %vm1851_vm15, %v1867_v15, %v1827_v4  ;;  %v1874_v41 = vsel %vm1852_vm12, %v1868_v35, %v1828_v5  ;;  %vm1992_vm15 = vcmask 15360  }
 0x2db   : > { %v1907_v38 = vsel %vm1906_vm8, %v1899_v24, %v1901_v36 }
 0x2dc   : > { %v1903_v40 = vpop.permute.xlu1 %1902  ;;  %v1913_v43 = vsel %vm1891_vm13, %v1907_v38, %v1873_v37 }
 0x2dd   : > { %v1908_v42 = vsel %vm1906_vm8, %v1901_v36, %v1903_v40 }
 0x2de   : > { %v1914_v44 = vsel %vm1892_vm7, %v1908_v42, %v1874_v41  ;;  %v1865_v45 = vpop.permute.xlu0 %1864  ;;  %vm1952_vm7 = vcmask 1031168   ;;  %v3687_v42 = vld [vmem:[%s4521_s2 + $0x4] sm:$0xf] }
 0x2df   : > { %v1918_v46 = vcombine.low %v1913_v43, %v1914_v44  ;;  %v1869_v47 = vsel %vm1866_vm14, %v1863_v18, %v1865_v45  ;;  %v3974_v54 = vcombine.low %v1914_v44, %v1914_v44 }
 0x2e0   : > { %v1875_v48 = vsel %vm1853_vm6, %v1869_v47, %v1829_v6  ;;  %v1905_v49 = vpop.permute.xlu1 %1904  ;;  %vm237_vm6 = vcmp.eq.s32.totalorder %v4244_v16, 17 }
 0x2e1   : > { %1920 = vst [vmem:[#allocation2 + $0x4] sm:$0xff] %v1918_v46  ;;  %v1909_v50 = vsel %vm1906_vm8, %v1903_v40, %v1905_v49  ;;  %v1964_v62 = vsel %vm237_vm6, 1, %v3994_v20 }
 0x2e2   : > { %v1915_v51 = vsel %vm1893_vm5, %v1909_v50, %v1875_v48  ;;  %vm236_vm5 = vcmp.eq.s32.totalorder %v4244_v16, 0  ;;  %v1968_v5 = vrot.slane %v1964_v62, %v4253_v22  ;;  %v1972_v6 = vrot.slane %v1964_v62, %v4255_v23  ;;  %v2008_v50 = vld [vmem:[%s4521_s2] sm:$0xf] }
 0x2e3   : > { %1921 = vst [vmem:[#allocation2 + $0xc] sm:$0xf] %v1915_v51  ;;  %v1924_v60 = vsel %vm236_vm5, 1, %v3994_v20 }
 0x2e4   : > { %v1932_v63 = vrot.slane %v1924_v60, %v4255_v23  ;;  %v1928_v4 = vrot.slane %v1924_v60, %v4253_v22  ;;  %vm1977_vm12 = vcmp.eq.s32.totalorder %v1968_v5, 1  ;;  %vm1978_vm13 = vcmp.eq.s32.totalorder %v1972_v6, 1  ;;  %v3704_v5 = vld [vmem:[%s4521_s2 + $0xc] sm:$0xf] }
 0x2e5   : > { %v1936_v10 = vrot.slane %v1924_v60, %v4250_v19  ;;  %v1976_v22 = vrot.slane %v1964_v62, %v4250_v19 }
 0x2e6   : > { %vm4308_vm8 = vcmp.eq.s32.totalorder %v1932_v63, 1  ;;  %vm1937_vm14 = vcmp.eq.s32.totalorder %v1928_v4, 1 }
 0x2e7   : > { %vm1939_vm5 = vcmp.eq.s32.totalorder %v1936_v10, 1  ;;  %vm1979_vm6 = vcmp.eq.s32.totalorder %v1976_v22, 1  ;;  %v3710_v22 = vld [vmem:[%s4521_s2 + $0x10] sm:$0xf] }
 0x2e8   : > { %v1962_v52 = vld [vmem:[#allocation2] sm:$0xff] }
 0x2e9   : > { %1984 = vrot.lane.b32.xlu1 %v1962_v52, %s3997_s17  ;;  %v1982_v56 = vcombine.high %v1962_v52, %v1962_v52 }
 0x2ea   : > { %v1923_v53 = vld [vmem:[#allocation2 + $0xc] sm:$0xff] }
 0x2eb   : > { %1948 = vrot.lane.b32.xlu0 %v1923_v53, %s3998_s21  ;;  %v1963_v55 = vld [vmem:[#allocation2 + $0x8] sm:$0xff]  ;;  %v1943_v58 = vcombine.high %v1923_v53, %v1923_v53 }
 0x2ec   : > { %v1983_v57 = vcombine.high %v1963_v55, %v1963_v55 }
 0x2ed   : > { %1946 = vrot.lane.b32.xlu1 %v3974_v54, %s3998_s21 }
 0x2ef   : > { %1944 = vrot.lane.b32.xlu0 %v1918_v46, %s3998_s21 }
 0x2f1   : > { %1988 = vrot.lane.b32.xlu1 %v1963_v55, %s3997_s17 }
 0x2f3   : > { %1986 = vrot.lane.b32.xlu0 %v1982_v56, %s3997_s17 }
 0x2f5   : > { %1990 = vrot.lane.b32.xlu1 %v1983_v57, %s3997_s17  ;;  %s224_s17 = scalar_lea.vmem %s4524_s5, %s3932_s20 }
 0x2f7   : > { %1950 = vrot.lane.b32.xlu0 %v1943_v58, %s3998_s21  ;;  %v3698_v58 = vld [vmem:[%s4521_s2 + $0x8] sm:$0xf] }
 0x35b   : > { %v1985_v59 = vpop.permute.xlu1 %1984 }
 0x35d   : > { %v1949_v61 = vpop.permute.xlu0 %1948 }
 0x35f   : > { %v1947_v3 = vpop.permute.xlu1 %1946 }
 0x360   : > { %v1954_v16 = vsel %vm1952_vm7, %v1947_v3, %v1949_v61 }
 0x361   : > { %v1945_v7 = vpop.permute.xlu0 %1944  ;;  %v1960_v23 = vsel %vm4308_vm8, %v1954_v16, %v1914_v44  ;;  %vm4542_vm8 = vcmask 7168  }
 0x362   : > { %v1953_v20 = vsel %vm1952_vm7, %v1945_v7, %v1947_v3 }
 0x363   : > { %v1989_v9 = vpop.permute.xlu1 %1988  ;;  %v1959_v12 = vsel %vm1937_vm14, %v1953_v20, %v1913_v43  ;;  %vm4543_vm14 = vmmov %vm4542_vm8 }
 0x365   : > { %v1987_v11 = vpop.permute.xlu0 %1986 }
 0x366   : > { %v1993_v13 = vsel %vm1992_vm15, %v1985_v59, %v1987_v11  ;;  %v1994_v14 = vsel %vm1992_vm15, %v1987_v11, %v1989_v9 }
 0x367   : > { %v1999_v17 = vsel %vm1977_vm12, %v1993_v13, %v1959_v12  ;;  %v2000_v18 = vsel %vm1978_vm13, %v1994_v14, %v1960_v23  ;;  %v1991_v24 = vpop.permute.xlu1 %1990  ;;  %vm4545_vm12 = vcmask 1039360  }
 0x368   : > { %v4320_v21 = vcombine.low %v1999_v17, %v2000_v18  ;;  %v1995_v26 = vsel %vm1992_vm15, %v1989_v9, %v1991_v24  ;;  %v4341_v35 = vcombine.low %v2000_v18, %v2000_v18  ;;  %vm4544_vm15 = vmmov %vm4542_vm8  ;;  %v3716_v24 = vld [vmem:[%s4521_s2 + $0x14] sm:$0xf] }
 0x369   : > { %v1951_v25 = vpop.permute.xlu0 %1950  ;;  %vm4546_vm13 = vmmov %vm4545_vm12 }
 0x36a   : > { %2006 = vst [vmem:[#allocation2 + $0x4] sm:$0xff] %v4320_v21  ;;  %v1955_v19 = vsel %vm1952_vm7, %v1949_v61, %v1951_v25 }
 0x36b   : > { %v1961_v29 = vsel %vm1939_vm5, %v1955_v19, %v1915_v51  ;;  %vm4547_vm5 = vmmov %vm4545_vm12 }
 0x36c   : > { %v2001_v31 = vsel %vm1979_vm6, %v1995_v26, %v1961_v29  ;;  %vm4548_vm6 = vcmask 908288  }
 0x36d   : > { %2007 = vst [vmem:[#allocation2 + $0xc] sm:$0xf] %v2001_v31 }
 0x371   : > { %v2009_v32 = vld [vmem:[#allocation2] sm:$0xff] }
 0x372   : > { %v2015_v33 = vcombine.high %v2009_v32, %v2009_v32 }
 0x374   : > { %2019 = vrot.lane.b32.xlu0 %v2015_v33, %s3986_s24  ;;  %v2010_v15 = vld [vmem:[#allocation2 + $0x8] sm:$0xff] }
 0x375   : > { %2021 = vrot.lane.b32.xlu1 %v2010_v15, %s3986_s24  ;;  %v2016_v34 = vcombine.high %v2010_v15, %v2010_v15  ;;  %v2846_v36 = vld [vmem:[#allocation2 + $0xc] sm:$0xff] }
 0x376   : > { %v2850_v37 = vcombine.high %v2846_v36, %v2846_v36  ;;  %v2686_v20 = vld [vmem:[#allocation2 + $0xc] sm:$0xf] }
 0x378   : > { %2017 = vrot.lane.b32.xlu0 %v2009_v32, %s3986_s24 }
 0x379   : > { %2023 = vrot.lane.b32.xlu1 %v2016_v34, %s3986_s24 }
 0x37c   : > { %2180 = vrot.lane.b32.xlu0 %v2015_v33, %s3987_s25 }
 0x37d   : > { %2182 = vrot.lane.b32.xlu1 %v2010_v15, %s3987_s25 }
 0x380   : > { %2178 = vrot.lane.b32.xlu0 %v2009_v32, %s3987_s25 }
 0x381   : > { %2184 = vrot.lane.b32.xlu1 %v2016_v34, %s3987_s25 }
 0x384   : > { %2349 = vrot.lane.b32.xlu0 %v2015_v33, %s3988_s26 }
 0x385   : > { %2351 = vrot.lane.b32.xlu1 %v2010_v15, %s3988_s26 }
 0x388   : > { %2347 = vrot.lane.b32.xlu0 %v2009_v32, %s3988_s26 }
 0x389   : > { %2353 = vrot.lane.b32.xlu1 %v2016_v34, %s3988_s26 }
 0x38c   : > { %2521 = vrot.lane.b32.xlu0 %v2015_v33, %s3989_s27 }
 0x38d   : > { %2523 = vrot.lane.b32.xlu1 %v2010_v15, %s3989_s27  ;;  %v3722_v15 = vld [vmem:[%s4521_s2 + $0x18] sm:$0xf] }
 0x390   : > { %2519 = vrot.lane.b32.xlu0 %v2009_v32, %s3989_s27 }
 0x391   : > { %2525 = vrot.lane.b32.xlu1 %v2016_v34, %s3989_s27 }
 0x394   : > { %2853 = vrot.lane.b32.xlu0 %v4341_v35, %s3990_s28 }
 0x395   : > { %2855 = vrot.lane.b32.xlu1 %v2846_v36, %s3990_s28 }
 0x398   : > { %2851 = vrot.lane.b32.xlu0 %v4320_v21, %s3990_s28 }
 0x399   : > { %2857 = vrot.lane.b32.xlu1 %v2850_v37, %s3990_s28 }
 0x39c   : > { %3025 = vrot.lane.b32.xlu0 %v4341_v35, %s3991_s29 }
 0x39d   : > { %3027 = vrot.lane.b32.xlu1 %v2846_v36, %s3991_s29 }
 0x3a0   : > { %3023 = vrot.lane.b32.xlu0 %v4320_v21, %s3991_s29 }
 0x3a1   : > { %3029 = vrot.lane.b32.xlu1 %v2850_v37, %s3991_s29 }
 0x3a4   : > { %3197 = vrot.lane.b32.xlu0 %v4341_v35, %s3992_s30 }
 0x3a5   : > { %3199 = vrot.lane.b32.xlu1 %v2846_v36, %s3992_s30 }
 0x3a8   : > { %3195 = vrot.lane.b32.xlu0 %v4320_v21, %s3992_s30 }
 0x3a9   : > { %3201 = vrot.lane.b32.xlu1 %v2850_v37, %s3992_s30 }
 0x3ac   : > { %3369 = vrot.lane.b32.xlu0 %v4341_v35, %s3993_s6 }
 0x3ad   : > { %3371 = vrot.lane.b32.xlu1 %v2846_v36, %s3993_s6 }
 0x3b0   : > { %3367 = vrot.lane.b32.xlu0 %v4320_v21, %s3993_s6 }
 0x3b1   : > { %3373 = vrot.lane.b32.xlu1 %v2850_v37, %s3993_s6 }
 0x3e6   : > { %v2020_v38 = vpop.permute.xlu0 %2019 }
 0x3e7   : > { %v2022_v39 = vpop.permute.xlu1 %2021 }
 0x3e8   : > { %v2026_v40 = vsel %vm262_vm1, %v2020_v38, %v2022_v39 }
 0x3e9   : > { %3688 = vmatprep.subr.msk.mxu0 %vm270_vm2, %v2026_v40 }
 0x3ea   : > { %v2018_v41 = vpop.permute.xlu0 %2017 }
 0x3eb   : > { %v2025_v43 = vsel %vm262_vm1, %v2018_v41, %v2020_v38  ;;  %v2024_v44 = vpop.permute.xlu1 %2023  ;;  %v3728_v41 = vld [vmem:[%s4521_s2 + $0x1c] sm:$0xf] }
 0x3ec   : > { %v2027_v45 = vsel %vm262_vm1, %v2022_v39, %v2024_v44  ;;  %3689 = vmatpush1.msk.msra.mxu0 %vm270_vm2, %v2025_v43  ;;  %vm4539_vm1 = vcmask 138240  }
 0x3ed   : > { %3690 = vmatmul.mubr.msk.f32.vlgmr.msra.gmra.mrb[2].mxu0 %vm266_vm3, %v3687_v42  ;;  %3824 = vmatpush3.msk.msra.mxu1 %vm270_vm2, %v2027_v45  ;;  %vm4541_vm7 = vmmov %vm4539_vm1  ;;  %v3734_v45 = vld [vmem:[%s4521_s2 + $0x20] sm:$0xf] }
 0x3ee   : > { %v2181_v46 = vpop.permute.xlu0 %2180  ;;  %3826 = vmatmul.mubr.msk.f32.vlgmr.msra.gmra.mrb[2].mxu1 %vm266_vm3, %v3687_v42  ;;  %2262 = vmatprep.mubr.f32.mxu0 %v3984_v0 }
 0x3ef   : > { %v2183_v47 = vpop.permute.xlu1 %2182  ;;  %3828 = vmatprep.subr.mxu1 %v3984_v0  ;;  %3830 = vmatprep.mubr.msk.f32.mxu1 %vm3985_vm0, %v3984_v0 }
 0x3f0   : > { %v2187_v48 = vsel %vm426_vm4, %v2181_v46, %v2183_v47 }
 0x3f1   : > { %3693 = vmatprep.subr.msk.mxu0 %vm270_vm2, %v2187_v48 }
 0x3f2   : > { %v2179_v49 = vpop.permute.xlu0 %2178 }
 0x3f3   : > { %v2186_v51 = vsel %vm426_vm4, %v2179_v49, %v2181_v46  ;;  %v2185_v52 = vpop.permute.xlu1 %2184 }
 0x3f4   : > { %v2188_v53 = vsel %vm426_vm4, %v2183_v47, %v2185_v52  ;;  %3694 = vmatpush1.msk.msra.mxu0 %vm270_vm2, %v2186_v51  ;;  %vm4540_vm4 = vmmov %vm4539_vm1 }
 0x3f5   : > { %3695 = vmatmul.mubr.msk.f32.vlgmr.msra.gmra.mrb[2].mxu0 %vm266_vm3, %v2008_v50  ;;  %3829 = vmatpush3.msk.msra.mxu1 %vm270_vm2, %v2188_v53 }
 0x3f6   : > { %v2350_v54 = vpop.permute.xlu0 %2349  ;;  %3831 = vmatmul.mubr.msk.f32.vlgmr.msra.gmra.mrb[2].mxu1 %vm266_vm3, %v2008_v50  ;;  %2431 = vmatprep.mubr.f32.mxu0 %v3984_v0 }
 0x3f7   : > { %v2352_v55 = vpop.permute.xlu1 %2351  ;;  %3833 = vmatprep.subr.mxu1 %v3984_v0  ;;  %3835 = vmatprep.mubr.msk.f32.mxu1 %vm3985_vm0, %v3984_v0 }
 0x3f8   : > { %v2356_v56 = vsel %vm4539_vm1, %v2350_v54, %v2352_v55  ;;  %vm4549_vm1 = vmmov %vm4548_vm6 }
 0x3f9   : > { %3699 = vmatprep.subr.msk.mxu0 %vm270_vm2, %v2356_v56 }
 0x3fa   : > { %v2348_v57 = vpop.permute.xlu0 %2347 }
 0x3fb   : > { %v2355_v59 = vsel %vm4540_vm4, %v2348_v57, %v2350_v54  ;;  %v2354_v60 = vpop.permute.xlu1 %2353  ;;  %vm4550_vm4 = vmmov %vm4549_vm1 }
 0x3fc   : > { %v2357_v61 = vsel %vm4541_vm7, %v2352_v55, %v2354_v60  ;;  %3700 = vmatpush1.msk.msra.mxu0 %vm270_vm2, %v2355_v59  ;;  %vm4551_vm7 = vcmask 900096  }
 0x3fd   : > { %3701 = vmatmul.mubr.msk.f32.vlgmr.msra.gmra.mrb[2].mxu0 %vm266_vm3, %v3698_v58  ;;  %3834 = vmatpush3.msk.msra.mxu1 %vm270_vm2, %v2357_v61 }
 0x3fe   : > { %v2522_v62 = vpop.permute.xlu0 %2521  ;;  %3836 = vmatmul.mubr.msk.f32.vlgmr.msra.gmra.mrb[2].mxu1 %vm266_vm3, %v3698_v58  ;;  %2603 = vmatprep.mubr.f32.mxu0 %v3984_v0 }
 0x3ff   : > { %v2524_v63 = vpop.permute.xlu1 %2523  ;;  %3838 = vmatprep.subr.mxu1 %v3984_v0  ;;  %3840 = vmatprep.mubr.msk.f32.mxu1 %vm3985_vm0, %v3984_v0 }
 0x400   : > { %v2528_v3 = vsel %vm4542_vm8, %v2522_v62, %v2524_v63  ;;  %vm4552_vm8 = vmmov %vm4551_vm7 }
 0x401   : > { %3705 = vmatprep.subr.msk.mxu0 %vm270_vm2, %v2528_v3 }
 0x402   : > { %v2520_v4 = vpop.permute.xlu0 %2519 }
 0x403   : > { %v2527_v6 = vsel %vm4543_vm14, %v2520_v4, %v2522_v62  ;;  %v2526_v7 = vpop.permute.xlu1 %2525  ;;  %vm4553_vm14 = vmmov %vm4551_vm7 }
 0x404   : > { %v2529_v8 = vsel %vm4544_vm15, %v2524_v63, %v2526_v7  ;;  %3706 = vmatpush1.msk.msra.mxu0 %vm270_vm2, %v2527_v6  ;;  %vm4554_vm15 = vcmask 891904  }
 0x405   : > { %3707 = vmatmul.mubr.msk.f32.vlgmr.msra.gmra.mrb[2].mxu0 %vm266_vm3, %v3704_v5  ;;  %3839 = vmatpush3.msk.msra.mxu1 %vm270_vm2, %v2529_v8 }
 0x406   : > { %3711 = vmatprep.subr.msk.mxu0 %vm270_vm2, %v4341_v35  ;;  %v2854_v16 = vpop.permute.xlu0 %2853  ;;  %3841 = vmatmul.mubr.msk.f32.vlgmr.msra.gmra.mrb[2].mxu1 %vm266_vm3, %v3704_v5 }
 0x407   : > { %3712 = vmatpush1.msk.msra.mxu0 %vm270_vm2, %v4320_v21  ;;  %3843 = vmatprep.subr.mxu1 %v3984_v0  ;;  %v2856_v9 = vpop.permute.xlu1 %2855 }
 0x408   : > { %3844 = vmatpush3.msk.msra.mxu1 %vm270_vm2, %v2686_v20  ;;  %v2860_v10 = vsel %vm4545_vm12, %v2854_v16, %v2856_v9  ;;  %2763 = vmatprep.mubr.f32.mxu0 %v3984_v0  ;;  %vm4555_vm12 = vmmov %vm4554_vm15 }
 0x409   : > { %3717 = vmatprep.subr.msk.mxu0 %vm270_vm2, %v2860_v10  ;;  %3845 = vmatprep.mubr.msk.f32.mxu1 %vm3985_vm0, %v3984_v0 }
 0x40a   : > { %v2852_v11 = vpop.permute.xlu0 %2851  ;;  %3848 = vmatprep.subr.mxu1 %v3984_v0 }
 0x40b   : > { %v2859_v23 = vsel %vm4546_vm13, %v2852_v11, %v2854_v16  ;;  %v2858_v12 = vpop.permute.xlu1 %2857  ;;  %vm4556_vm13 = vmmov %vm4555_vm12 }
 0x40c   : > { %v2861_v13 = vsel %vm4547_vm5, %v2856_v9, %v2858_v12 }
 0x40d   : > { %3713 = vmatmul.mubr.msk.f32.vlgmr.msra.gmra.mrb[2].mxu0 %vm266_vm3, %v3710_v22 }
 0x40e   : > { %3718 = vmatpush1.msk.msra.mxu0 %vm270_vm2, %v2859_v23  ;;  %v3026_v14 = vpop.permute.xlu0 %3025  ;;  %3846 = vmatmul.mubr.msk.f32.vlgmr.msra.gmra.mrb[2].mxu1 %vm266_vm3, %v3710_v22 }
 0x40f   : > { %3849 = vmatpush3.msk.msra.mxu1 %vm270_vm2, %v2861_v13  ;;  %v3028_v17 = vpop.permute.xlu1 %3027  ;;  %2935 = vmatprep.mubr.f32.mxu0 %v3984_v0 }
 0x410   : > { %v3032_v18 = vsel %vm4548_vm6, %v3026_v14, %v3028_v17  ;;  %3850 = vmatprep.mubr.msk.f32.mxu1 %vm3985_vm0, %v3984_v0  ;;  %3853 = vmatprep.subr.mxu1 %v3984_v0 }
 0x411   : > { %3723 = vmatprep.subr.msk.mxu0 %vm270_vm2, %v3032_v18 }
 0x412   : > { %v3024_v21 = vpop.permute.xlu0 %3023 }
 0x413   : > { %v3031_v25 = vsel %vm4549_vm1, %v3024_v21, %v3026_v14  ;;  %v3030_v19 = vpop.permute.xlu1 %3029 }
 0x414   : > { %v3033_v26 = vsel %vm4550_vm4, %v3028_v17, %v3030_v19 }
 0x415   : > { %3719 = vmatmul.mubr.msk.f32.vlgmr.msra.gmra.mrb[2].mxu0 %vm266_vm3, %v3716_v24 }
 0x416   : > { %3724 = vmatpush1.msk.msra.mxu0 %vm270_vm2, %v3031_v25  ;;  %v3198_v29 = vpop.permute.xlu0 %3197  ;;  %3851 = vmatmul.mubr.msk.f32.vlgmr.msra.gmra.mrb[2].mxu1 %vm266_vm3, %v3716_v24 }
 0x417   : > { %3854 = vmatpush3.msk.msra.mxu1 %vm270_vm2, %v3033_v26  ;;  %v3200_v31 = vpop.permute.xlu1 %3199  ;;  %3107 = vmatprep.mubr.f32.mxu0 %v3984_v0 }
 0x418   : > { %v3204_v32 = vsel %vm4551_vm7, %v3198_v29, %v3200_v31  ;;  %3855 = vmatprep.mubr.msk.f32.mxu1 %vm3985_vm0, %v3984_v0  ;;  %3858 = vmatprep.subr.mxu1 %v3984_v0 }
 0x419   : > { %3729 = vmatprep.subr.msk.mxu0 %vm270_vm2, %v3204_v32 }
 0x41a   : > { %v3196_v33 = vpop.permute.xlu0 %3195 }
 0x41b   : > { %v3203_v34 = vsel %vm4552_vm8, %v3196_v33, %v3198_v29  ;;  %v3202_v35 = vpop.permute.xlu1 %3201 }
 0x41c   : > { %v3205_v36 = vsel %vm4553_vm14, %v3200_v31, %v3202_v35 }
 0x41d   : > { %3725 = vmatmul.mubr.msk.f32.vlgmr.msra.gmra.mrb[2].mxu0 %vm266_vm3, %v3722_v15 }
 0x41e   : > { %3730 = vmatpush1.msk.msra.mxu0 %vm270_vm2, %v3203_v34  ;;  %v3370_v37 = vpop.permute.xlu0 %3369  ;;  %3856 = vmatmul.mubr.msk.f32.vlgmr.msra.gmra.mrb[2].mxu1 %vm266_vm3, %v3722_v15 }
 0x41f   : > { %3859 = vmatpush3.msk.msra.mxu1 %vm270_vm2, %v3205_v36  ;;  %v3372_v38 = vpop.permute.xlu1 %3371  ;;  %3279 = vmatprep.mubr.f32.mxu0 %v3984_v0 }
 0x420   : > { %v3376_v39 = vsel %vm4554_vm15, %v3370_v37, %v3372_v38  ;;  %3860 = vmatprep.mubr.msk.f32.mxu1 %vm3985_vm0, %v3984_v0  ;;  %3863 = vmatprep.subr.mxu1 %v3984_v0 }
 0x421   : > { %3735 = vmatprep.subr.msk.mxu0 %vm270_vm2, %v3376_v39 }
 0x422   : > { %v3368_v40 = vpop.permute.xlu0 %3367 }
 0x423   : > { %v3375_v42 = vsel %vm4555_vm12, %v3368_v40, %v3370_v37  ;;  %v3374_v43 = vpop.permute.xlu1 %3373 }
 0x424   : > { %v3377_v44 = vsel %vm4556_vm13, %v3372_v38, %v3374_v43 }
 0x425   : > { %3731 = vmatmul.mubr.msk.f32.vlgmr.msra.gmra.mrb[2].mxu0 %vm266_vm3, %v3728_v41 }
 0x426   : > { %3736 = vmatpush1.msk.msra.mxu0 %vm270_vm2, %v3375_v42  ;;  %3861 = vmatmul.mubr.msk.f32.vlgmr.msra.gmra.mrb[2].mxu1 %vm266_vm3, %v3728_v41 }
 0x427   : > { %3864 = vmatpush3.msk.msra.mxu1 %vm270_vm2, %v3377_v44  ;;  %3451 = vmatprep.mubr.f32.mxu0 %v3984_v0 }
 0x428   : > { %3865 = vmatprep.mubr.msk.f32.mxu1 %vm3985_vm0, %v3984_v0 }
 0x42d   : > { %3737 = vmatmul.mubr.msk.f32.vlgmr.msra.gmra.mrb[2].mxu0 %vm266_vm3, %v3734_v45 }
 0x42e   : > { %3866 = vmatmul.mubr.msk.f32.vlgmr.msra.gmra.mrb[2].mxu1 %vm266_vm3, %v3734_v45 }
 0x500   : > { %v3453_v46 = vpop.f32.mrb[2].mxu0 }
 0x501   : > { %v3531_v47 = vsel %vm4264_vm10, %v3453_v46, 0.0  ;;  %v3455_v48 = vpop.f32.mrb[3].mxu0  ;;  %v3524_v49 = vpop.f32.mrb[2].mxu1 }
 0x502   : > { %v3534_v50 = vsel %vm270_vm2, %v3531_v47, 0.0  ;;  %v3541_v51 = vmul.f32 %v3531_v47, %v3531_v47  ;;  %v3532_v0 = vsel %vm4268_vm9, %v3455_v48, 0.0  ;;  %v3533_v52 = vsel %vm4260_vm11, %v3524_v49, 0.0  ;;  %v3867_v53 = vpop.f32.mrb[3].mxu1 }
 0x503   : > { %v3535_v54 = vsel %vm270_vm2, %v3532_v0, 0.0  ;;  %v3542_v55 = vmul.f32 %v3532_v0, %v3532_v0  ;;  %v3543_v56 = vmul.f32 %v3533_v52, %v3533_v52  ;;  %v3537_v59 = vsel %vm270_vm2, %v3533_v52, 0.0 }
 0x504   : > { %v3536_v57 = vadd.f32 %v3535_v54, %v3534_v50  ;;  %v3544_v28 = vsel %vm270_vm2, %v3541_v51, 0.0 }
 0x505   : > { %v3545_v58 = vsel %vm270_vm2, %v3542_v55, 0.0  ;;  %v3547_v30 = vsel %vm270_vm2, %v3543_v56, 0.0 }
 0x506   : > { %v3538_v60 = vadd.f32 %v3537_v59, %v3536_v57  ;;  %v3546_v61 = vadd.f32 %v3545_v58, %v3544_v28 }
 0x508   : > { %3539 = vadd.xlane.f32.xlu0 %v3538_v60  ;;  %v3548_v62 = vadd.f32 %v3547_v30, %v3546_v61 }
 0x50a   : > { %3549 = vadd.xlane.f32.xlu1 %v3548_v62 }
 0x595   : > { %v3540_v27 = vpop.xlane.xlu0 %3539 }
 0x596   : > { %v3551_v63 = vmul.f32 0.00390625, %v3540_v27 }
 0x597   : > { %v3550_v3 = vpop.xlane.xlu1 %3549 }
 0x598   : > { %v3552_v4 = vmul.f32 0.00390625, %v3550_v3  ;;  %v3553_v5 = vmul.f32 %v3551_v63, %v3551_v63  ;;  %v3556_v16 = vsub.f32 %v3453_v46, %v3551_v63  ;;  %v3557_v20 = vsub.f32 %v3455_v48, %v3551_v63 }
 0x599   : > { %v3558_v9 = vsub.f32 %v3524_v49, %v3551_v63 }
 0x59a   : > { %v3554_v6 = vsub.f32 %v3552_v4, %v3553_v5 }
 0x59c   : > { %v3555_v7 = vmax.f32 %v3554_v6, 0.0 }
 0x59e   : > { %v3559_v8 = vadd.f32 1e-05, %v3555_v7 }
 0x5a0   : > { %3971 = vrsqrt.f32 %v3559_v8 }
 0x5aa   : > { %v3972_v10 = vpop.eup %3971 }
 0x5ab   : > { %v3561_v11 = vmul.f32 %v3972_v10, %v3556_v16  ;;  %v3562_v22 = vmul.f32 %v3972_v10, %v3557_v20  ;;  %v3563_v23 = vmul.f32 %v3972_v10, %v3558_v9 }
 0x5ad   : > { %v3566_v12 = vcombine.low %v3561_v11, %v3562_v22  ;;  %v3569_v13 = vadd.f32 %v3563_v23, %v4052_v2 }
 0x5af   : > { %v3568_v14 = vadd.f32 %v3566_v12, %v4050_v1  ;;  %3571 = vst [vmem:[%s224_s17 + $0x8] sm:$0xf] %v3569_v13 }
 0x5b1   : > { %3570 = vst [vmem:[%s224_s17] sm:$0xff] %v3568_v14 }
 0x5b2 PF: > { %s15_s18 = sadd.s32 1, %s3982_s18  }
 0x5b3   : > { %p12_p4 = scmp.ge.s32.totalorder %s15_s18, 4  }
 0x5b5   :  { %14 = sbr.rel (!%p12_p4) target bundleno = 1 (0x1), region = 86 }

</bundles_post_ra>
